<compile_context>
chip_gen: v7x
topology: tpu7x:2x2x1
jax: 0.10.0
libtpu: 0.0.40
codegen_flags: <defaults>
</compile_context>

<pallas_src>
import functools

import jax
import jax.numpy as jnp
from jax.experimental import pallas as pl
from jax.experimental.pallas import tpu as pltpu


def _round_up(x, m):
    return (x + m - 1) // m * m


def _vae_kernel(
    x_ref, noise_ref,                          # (TB, 784) f32, (TB, 2) f32
    wc1, bc1, wc2, bc2,                        # common_fc (padded, bf16 W / f32 b)
    wh1, bh1, wh2, bh2,                        # fused mean|log_var head (padded)
    wd1, bd1, wd2, bd2, wd3, bd3, wd4, bd4,    # decoder_fc (padded)
    out_ref, stats_ref,                        # (TB, 784) bf16, (TB, 128) f32
):
    f32 = jnp.float32
    bf16 = jnp.bfloat16

    def dense(x, w_ref, b_ref):
        # bf16 MXU matmul with f32 accumulation; bias added in f32.
        return jnp.dot(x.astype(bf16), w_ref[...],
                       preferred_element_type=f32) + b_ref[...]

    def dense_tanh(x, w_ref, b_ref):
        # tanh in f32 (v5e has no bf16 EUP); carry the activation in bf16 to
        # cut vreg/VMEM pressure and feed the next MXU op directly.
        return jnp.tanh(dense(x, w_ref, b_ref)).astype(bf16)

    # ---- encoder: common_fc -------------------------------------------------
    h = dense_tanh(x_ref[...], wc1, bc1)         # (TB, 256), cols >=196 are 0
    h = dense_tanh(h, wc2, bc2)                  # (TB, 128), cols >=48 are 0

    # ---- fused mean_fc | log_var_fc -----------------------------------------
    hv = dense_tanh(h, wh1, bh1)                 # cols 0:16 mean branch, 16:32 var branch
    stats = dense(hv, wh2, bh2)                  # cols 0:2 mean, 2:4 log_var, rest 0
    stats_ref[...] = stats                       # lane-dense packed f32 store

    # ---- reparameterization -------------------------------------------------
    mean = stats[:, 0:2]
    log_var = stats[:, 2:4]
    std = jnp.exp(0.5 * log_var)                 # == exp(log_var) ** 0.5
    z = mean + noise_ref[...] * std              # (TB, 2)

    # ---- decoder_fc ---------------------------------------------------------
    d = dense_tanh(z, wd1, bd1)                  # (TB, 128), cols >=16 are 0
    d = dense_tanh(d, wd2, bd2)                  # (TB, 128), cols >=48 are 0
    d = dense_tanh(d, wd3, bd3)                  # (TB, 256), cols >=196 are 0
    # bf16 writeback (largest HBM stream halved vs f32)
    out_ref[...] = jnp.tanh(dense(d, wd4, bd4)).astype(out_ref.dtype)


def pack_params(p):
    """Zero-pad to lane multiples, fuse mean/log_var head, cast weights to bf16."""
    f32, bf16 = jnp.float32, jnp.bfloat16

    def pad_w(w, rows, cols):
        out = jnp.zeros((rows, cols), f32).at[: w.shape[0], : w.shape[1]].set(w)
        return out.astype(bf16)

    def pad_b(b, cols):
        return jnp.zeros((1, cols), f32).at[:, : b.shape[1]].set(b)

    # fused head hidden: [mean-branch | var-branch]
    wh1 = jnp.zeros((128, 128), f32)
    wh1 = wh1.at[:48, 0:16].set(p["wm1"]).at[:48, 16:32].set(p["wv1"])
    bh1 = jnp.zeros((1, 128), f32).at[:, 0:16].set(p["bm1"]).at[:, 16:32].set(p["bv1"])
    # fused head output: block-diagonal -> cols 0:2 mean, 2:4 log_var
    wh2 = jnp.zeros((128, 128), f32)
    wh2 = wh2.at[0:16, 0:2].set(p["wm2"]).at[16:32, 2:4].set(p["wv2"])
    bh2 = jnp.zeros((1, 128), f32).at[:, 0:2].set(p["bm2"]).at[:, 2:4].set(p["bv2"])

    return (
        pad_w(p["wc1"], 784, 256), pad_b(p["bc1"], 256),
        pad_w(p["wc2"], 256, 128), pad_b(p["bc2"], 128),
        wh1.astype(bf16), bh1,
        wh2.astype(bf16), bh2,
        pad_w(p["wd1"], 2, 128),   pad_b(p["bd1"], 128),
        pad_w(p["wd2"], 128, 128), pad_b(p["bd2"], 128),
        pad_w(p["wd3"], 128, 256), pad_b(p["bd3"], 256),
        pad_w(p["wd4"], 256, 784), pad_b(p["bd4"], 784),
    )


@functools.partial(jax.jit, static_argnames=("block_b",))
def vae_forward(x_nchw, packed_params, noise, *, block_b=512):
    """x_nchw: (B, 1, 28, 28) f32; noise: (B, 2) ~ N(0,1).

    Returns (out (B,1,28,28) bf16, mean (B,2) f32, log_var (B,2) f32).
    block_b: batch tile upper bound (512 is a good default on v5e/v6e/v7x).
    """
    B = x_nchw.shape[0]
    x_flat = x_nchw.reshape(B, 784)              # nn.Flatten (no copy, no cast)

    # Tile selection: multiple of 8; prefer >= 2 grid steps so the "parallel"
    # batch axis can be split across both v7x TensorCores.
    b_pad = _round_up(B, 8)
    tb = min(block_b, b_pad)
    if b_pad // tb < 2 and b_pad >= 16:
        tb = _round_up(b_pad // 2, 8)
    b_pad = _round_up(b_pad, tb)

    if b_pad != B:
        x_flat = jnp.pad(x_flat, ((0, b_pad - B), (0, 0)))
        noise = jnp.pad(noise, ((0, b_pad - B), (0, 0)))

    # Weights: full-array blocks with constant index_map -> VMEM-resident.
    # (Single-buffering them via pl.Buffered(1) would buy a little extra VMEM
    #  headroom on v7x; left at the default since we are far under the limit.)
    weight_specs = [pl.BlockSpec(w.shape, lambda i: (0, 0)) for w in packed_params]
    in_specs = [
        pl.BlockSpec((tb, 784), lambda i: (i, 0)),   # x tile (f32, cast in-kernel)
        pl.BlockSpec((tb, 2), lambda i: (i, 0)),     # compact noise tile
    ] + weight_specs
    out_specs = (
        pl.BlockSpec((tb, 784), lambda i: (i, 0)),   # reconstruction tile (bf16)
        pl.BlockSpec((tb, 128), lambda i: (i, 0)),   # packed [mean|log_var] tile (f32)
    )

    # advisory cost estimate for XLA scheduling
    layer_dims = ((784, 256), (256, 128), (128, 128), (128, 128),
                  (2, 128), (128, 128), (128, 256), (256, 784))
    flops = 2 * b_pad * sum(k * n for k, n in layer_dims)
    transcendentals = b_pad * (256 + 128 + 128 + 128 + 128 + 256 + 784 + 2)
    bytes_accessed = (
        sum(int(w.size) * w.dtype.itemsize for w in packed_params)
        + b_pad * 784 * 4      # x read (f32)
        + b_pad * 2 * 4        # noise read
        + b_pad * 784 * 2      # reconstruction write (bf16)
        + b_pad * 128 * 4      # stats write (f32)
    )

    out, stats = pl.pallas_call(
        _vae_kernel,
        grid=(b_pad // tb,),
        out_shape=(
            jax.ShapeDtypeStruct((b_pad, 784), jnp.bfloat16),
            jax.ShapeDtypeStruct((b_pad, 128), jnp.float32),
        ),
        in_specs=in_specs,
        out_specs=out_specs,
        compiler_params=pltpu.CompilerParams(
            dimension_semantics=("parallel",),
            vmem_limit_bytes=32 * 1024 * 1024,
        ),
        cost_estimate=pl.CostEstimate(
            flops=int(flops),
            transcendentals=int(transcendentals),
            bytes_accessed=int(bytes_accessed),
        ),
    )(x_flat, noise, *packed_params)

    out_img = out[:B].reshape(B, 1, 28, 28)      # bf16 reconstruction
    mean = stats[:B, 0:2]
    log_var = stats[:B, 2:4]
    return out_img, mean, log_var


def init_params(key):
    """Deterministic parameter init; weights stored as (in, out)."""
    sizes = {
        "wc1": (784, 196), "bc1": (1, 196),
        "wc2": (196, 48),  "bc2": (1, 48),
        "wm1": (48, 16),   "bm1": (1, 16),
        "wm2": (16, 2),    "bm2": (1, 2),
        "wv1": (48, 16),   "bv1": (1, 16),
        "wv2": (16, 2),    "bv2": (1, 2),
        "wd1": (2, 16),    "bd1": (1, 16),
        "wd2": (16, 48),   "bd2": (1, 48),
        "wd3": (48, 196),  "bd3": (1, 196),
        "wd4": (196, 784), "bd4": (1, 784),
    }
    params = {}
    for i, (name, shape) in enumerate(sorted(sizes.items())):
        k = jax.random.fold_in(key, i)
        fan_in = shape[0] if name.startswith("w") else shape[1]
        bound = 1.0 / jnp.sqrt(jnp.float32(fan_in))
        params[name] = jax.random.uniform(
            k, shape, dtype=jnp.float32, minval=-bound, maxval=bound)
    return params


def reference_forward(x_nchw, params, noise):
    """Pure-JAX f32 reference (unfused, unpadded) for correctness checking."""
    B = x_nchw.shape[0]
    x = x_nchw.reshape(B, 784)
    h = jnp.tanh(x @ params["wc1"] + params["bc1"])
    h = jnp.tanh(h @ params["wc2"] + params["bc2"])
    m = jnp.tanh(h @ params["wm1"] + params["bm1"])
    mean = m @ params["wm2"] + params["bm2"]
    v = jnp.tanh(h @ params["wv1"] + params["bv1"])
    log_var = v @ params["wv2"] + params["bv2"]
    std = jnp.exp(log_var) ** 0.5
    z = mean + noise * std
    d = jnp.tanh(z @ params["wd1"] + params["bd1"])
    d = jnp.tanh(d @ params["wd2"] + params["bd2"])
    d = jnp.tanh(d @ params["wd3"] + params["bd3"])
    d = jnp.tanh(d @ params["wd4"] + params["bd4"])
    return d.reshape(B, 1, 28, 28), mean, log_var


if __name__ == "__main__":
    key = jax.random.PRNGKey(0)
    k_x, k_p, k_n = jax.random.split(key, 3)

    B = 8
    x = jax.random.normal(k_x, (B, 1, 28, 28), dtype=jnp.float32)
    params = init_params(k_p)
    # randn_like in reparameterization -> sampled once here for determinism
    noise = jax.random.normal(k_n, (B, 2), dtype=jnp.float32)

    packed = pack_params(params)
    out, mean, log_var = vae_forward(x, packed, noise)
    jax.block_until_ready((out, mean, log_var))

    # sanity check against pure-JAX f32 reference (bf16 matmuls/output -> looser tol)
    ref_out, ref_mean, ref_lv = reference_forward(x, params, noise)
    assert out.shape == (B, 1, 28, 28)
    assert mean.shape == (B, 2) and log_var.shape == (B, 2)
    assert jnp.allclose(out.astype(jnp.float32), ref_out, atol=5e-2, rtol=5e-2), \
        float(jnp.max(jnp.abs(out.astype(jnp.float32) - ref_out)))
    assert jnp.allclose(mean, ref_mean, atol=5e-2, rtol=5e-2), \
        float(jnp.max(jnp.abs(mean - ref_mean)))
    assert jnp.allclose(log_var, ref_lv, atol=5e-2, rtol=5e-2), \
        float(jnp.max(jnp.abs(log_var - ref_lv)))

    print("KERNEL_OK")
</pallas_src>

<mosaic_0001>
module attributes {stable_mosaic.version = 11 : i64} {
  func.func @_vae_kernel(%arg0: i32, %arg1: memref<8x784xf32, #tpu.memory_space<vmem>>, %arg2: memref<8x2xf32, #tpu.memory_space<vmem>>, %arg3: memref<784x256xbf16, #tpu.memory_space<vmem>>, %arg4: memref<1x256xf32, #tpu.memory_space<vmem>>, %arg5: memref<256x128xbf16, #tpu.memory_space<vmem>>, %arg6: memref<1x128xf32, #tpu.memory_space<vmem>>, %arg7: memref<128x128xbf16, #tpu.memory_space<vmem>>, %arg8: memref<1x128xf32, #tpu.memory_space<vmem>>, %arg9: memref<128x128xbf16, #tpu.memory_space<vmem>>, %arg10: memref<1x128xf32, #tpu.memory_space<vmem>>, %arg11: memref<2x128xbf16, #tpu.memory_space<vmem>>, %arg12: memref<1x128xf32, #tpu.memory_space<vmem>>, %arg13: memref<128x128xbf16, #tpu.memory_space<vmem>>, %arg14: memref<1x128xf32, #tpu.memory_space<vmem>>, %arg15: memref<128x256xbf16, #tpu.memory_space<vmem>>, %arg16: memref<1x256xf32, #tpu.memory_space<vmem>>, %arg17: memref<256x784xbf16, #tpu.memory_space<vmem>>, %arg18: memref<1x784xf32, #tpu.memory_space<vmem>>, %arg19: memref<8x784xbf16, #tpu.memory_space<vmem>>, %arg20: memref<8x128xf32, #tpu.memory_space<vmem>>) attributes {dimension_semantics = [#tpu.dimension_semantics<parallel>], iteration_bounds = array<i64: 1>, scalar_prefetch = 0 : i64, scratch_operands = 0 : i64, tpu.core_type = #tpu.core_type<tc>, window_params = [{transform_indices = @transform_0, window_bounds = array<i64: 8, 784>}, {transform_indices = @transform_1, window_bounds = array<i64: 8, 2>}, {pipeline_mode = #tpu.pipeline_mode<synchronous>, transform_indices = @transform_2, window_bounds = array<i64: 784, 256>}, {pipeline_mode = #tpu.pipeline_mode<synchronous>, transform_indices = @transform_3, window_bounds = array<i64: 1, 256>}, {pipeline_mode = #tpu.pipeline_mode<synchronous>, transform_indices = @transform_4, window_bounds = array<i64: 256, 128>}, {pipeline_mode = #tpu.pipeline_mode<synchronous>, transform_indices = @transform_5, window_bounds = array<i64: 1, 128>}, {pipeline_mode = #tpu.pipeline_mode<synchronous>, transform_indices = @transform_6, window_bounds = array<i64: 128, 128>}, {pipeline_mode = #tpu.pipeline_mode<synchronous>, transform_indices = @transform_7, window_bounds = array<i64: 1, 128>}, {pipeline_mode = #tpu.pipeline_mode<synchronous>, transform_indices = @transform_8, window_bounds = array<i64: 128, 128>}, {pipeline_mode = #tpu.pipeline_mode<synchronous>, transform_indices = @transform_9, window_bounds = array<i64: 1, 128>}, {pipeline_mode = #tpu.pipeline_mode<synchronous>, transform_indices = @transform_10, window_bounds = array<i64: 2, 128>}, {pipeline_mode = #tpu.pipeline_mode<synchronous>, transform_indices = @transform_11, window_bounds = array<i64: 1, 128>}, {pipeline_mode = #tpu.pipeline_mode<synchronous>, transform_indices = @transform_12, window_bounds = array<i64: 128, 128>}, {pipeline_mode = #tpu.pipeline_mode<synchronous>, transform_indices = @transform_13, window_bounds = array<i64: 1, 128>}, {pipeline_mode = #tpu.pipeline_mode<synchronous>, transform_indices = @transform_14, window_bounds = array<i64: 128, 256>}, {pipeline_mode = #tpu.pipeline_mode<synchronous>, transform_indices = @transform_15, window_bounds = array<i64: 1, 256>}, {pipeline_mode = #tpu.pipeline_mode<synchronous>, transform_indices = @transform_16, window_bounds = array<i64: 256, 784>}, {pipeline_mode = #tpu.pipeline_mode<synchronous>, transform_indices = @transform_17, window_bounds = array<i64: 1, 784>}, {transform_indices = @transform_18, window_bounds = array<i64: 8, 784>}, {transform_indices = @transform_19, window_bounds = array<i64: 8, 128>}]} {
    %c0 = arith.constant 0 : index
    %c0_0 = arith.constant 0 : index
    %0 = vector.load %arg1[%c0, %c0_0] : memref<8x784xf32, #tpu.memory_space<vmem>>, vector<8x784xf32>
    %1 = arith.truncf %0 : vector<8x784xf32> to vector<8x784xbf16>
    %c0_1 = arith.constant 0 : index
    %c0_2 = arith.constant 0 : index
    %2 = vector.load %arg3[%c0_1, %c0_2] : memref<784x256xbf16, #tpu.memory_space<vmem>>, vector<784x256xbf16>
    %cst = arith.constant dense<0.000000e+00> : vector<8x256xf32>
    %3 = tpu.matmul %1, %2, %cst {dimension_numbers = #tpu.dot_dimension_numbers<[1], [0], [0], [1], [0, 0, 1, 1], [], []>} : vector<8x784xbf16>, vector<784x256xbf16>, vector<8x256xf32> -> vector<8x256xf32>
    %c0_3 = arith.constant 0 : index
    %c0_4 = arith.constant 0 : index
    %4 = vector.load %arg4[%c0_3, %c0_4] : memref<1x256xf32, #tpu.memory_space<vmem>>, vector<1x256xf32>
    %5 = vector.broadcast %4 : vector<1x256xf32> to vector<8x256xf32>
    %6 = arith.addf %3, %5 : vector<8x256xf32>
    %7 = math.tanh %6 : vector<8x256xf32>
    %8 = arith.truncf %7 : vector<8x256xf32> to vector<8x256xbf16>
    %c0_5 = arith.constant 0 : index
    %c0_6 = arith.constant 0 : index
    %9 = vector.load %arg5[%c0_5, %c0_6] : memref<256x128xbf16, #tpu.memory_space<vmem>>, vector<256x128xbf16>
    %cst_7 = arith.constant dense<0.000000e+00> : vector<8x128xf32>
    %10 = tpu.matmul %8, %9, %cst_7 {dimension_numbers = #tpu.dot_dimension_numbers<[1], [0], [0], [1], [0, 0, 1, 1], [], []>} : vector<8x256xbf16>, vector<256x128xbf16>, vector<8x128xf32> -> vector<8x128xf32>
    %c0_8 = arith.constant 0 : index
    %c0_9 = arith.constant 0 : index
    %11 = vector.load %arg6[%c0_8, %c0_9] : memref<1x128xf32, #tpu.memory_space<vmem>>, vector<1x128xf32>
    %12 = vector.broadcast %11 : vector<1x128xf32> to vector<8x128xf32>
    %13 = arith.addf %10, %12 : vector<8x128xf32>
    %14 = math.tanh %13 : vector<8x128xf32>
    %15 = arith.truncf %14 : vector<8x128xf32> to vector<8x128xbf16>
    %c0_10 = arith.constant 0 : index
    %c0_11 = arith.constant 0 : index
    %16 = vector.load %arg7[%c0_10, %c0_11] : memref<128x128xbf16, #tpu.memory_space<vmem>>, vector<128x128xbf16>
    %cst_12 = arith.constant dense<0.000000e+00> : vector<8x128xf32>
    %17 = tpu.matmul %15, %16, %cst_12 {dimension_numbers = #tpu.dot_dimension_numbers<[1], [0], [0], [1], [0, 0, 1, 1], [], []>} : vector<8x128xbf16>, vector<128x128xbf16>, vector<8x128xf32> -> vector<8x128xf32>
    %c0_13 = arith.constant 0 : index
    %c0_14 = arith.constant 0 : index
    %18 = vector.load %arg8[%c0_13, %c0_14] : memref<1x128xf32, #tpu.memory_space<vmem>>, vector<1x128xf32>
    %19 = vector.broadcast %18 : vector<1x128xf32> to vector<8x128xf32>
    %20 = arith.addf %17, %19 : vector<8x128xf32>
    %21 = math.tanh %20 : vector<8x128xf32>
    %22 = arith.truncf %21 : vector<8x128xf32> to vector<8x128xbf16>
    %c0_15 = arith.constant 0 : index
    %c0_16 = arith.constant 0 : index
    %23 = vector.load %arg9[%c0_15, %c0_16] : memref<128x128xbf16, #tpu.memory_space<vmem>>, vector<128x128xbf16>
    %cst_17 = arith.constant dense<0.000000e+00> : vector<8x128xf32>
    %24 = tpu.matmul %22, %23, %cst_17 {dimension_numbers = #tpu.dot_dimension_numbers<[1], [0], [0], [1], [0, 0, 1, 1], [], []>} : vector<8x128xbf16>, vector<128x128xbf16>, vector<8x128xf32> -> vector<8x128xf32>
    %c0_18 = arith.constant 0 : index
    %c0_19 = arith.constant 0 : index
    %25 = vector.load %arg10[%c0_18, %c0_19] : memref<1x128xf32, #tpu.memory_space<vmem>>, vector<1x128xf32>
    %26 = vector.broadcast %25 : vector<1x128xf32> to vector<8x128xf32>
    %27 = arith.addf %24, %26 : vector<8x128xf32>
    %c0_20 = arith.constant 0 : index
    %c0_21 = arith.constant 0 : index
    %28 = vector.load %arg20[%c0_20, %c0_21] : memref<8x128xf32, #tpu.memory_space<vmem>>, vector<8x128xf32>
    tpu.vector_store %arg20[%c0_20, %c0_21], %27 {strides = array<i32>} : memref<8x128xf32, #tpu.memory_space<vmem>>, vector<8x128xf32>,
    %29 = vector.extract_strided_slice %27 {offsets = [0, 0], sizes = [8, 2], strides = [1, 1]} : vector<8x128xf32> to vector<8x2xf32>
    %30 = vector.extract_strided_slice %27 {offsets = [0, 2], sizes = [8, 2], strides = [1, 1]} : vector<8x128xf32> to vector<8x2xf32>
    %cst_22 = arith.constant 5.000000e-01 : f32
    %31 = vector.broadcast %cst_22 : f32 to vector<8x2xf32>
    %32 = arith.mulf %31, %30 : vector<8x2xf32>
    %33 = math.exp %32 : vector<8x2xf32>
    %c0_23 = arith.constant 0 : index
    %c0_24 = arith.constant 0 : index
    %34 = vector.load %arg2[%c0_23, %c0_24] : memref<8x2xf32, #tpu.memory_space<vmem>>, vector<8x2xf32>
    %35 = arith.mulf %34, %33 : vector<8x2xf32>
    %36 = arith.addf %29, %35 : vector<8x2xf32>
    %37 = arith.truncf %36 : vector<8x2xf32> to vector<8x2xbf16>
    %c0_25 = arith.constant 0 : index
    %c0_26 = arith.constant 0 : index
    %38 = vector.load %arg11[%c0_25, %c0_26] : memref<2x128xbf16, #tpu.memory_space<vmem>>, vector<2x128xbf16>
    %cst_27 = arith.constant dense<0.000000e+00> : vector<8x128xf32>
    %39 = tpu.matmul %37, %38, %cst_27 {dimension_numbers = #tpu.dot_dimension_numbers<[1], [0], [0], [1], [0, 0, 1, 1], [], []>} : vector<8x2xbf16>, vector<2x128xbf16>, vector<8x128xf32> -> vector<8x128xf32>
    %c0_28 = arith.constant 0 : index
    %c0_29 = arith.constant 0 : index
    %40 = vector.load %arg12[%c0_28, %c0_29] : memref<1x128xf32, #tpu.memory_space<vmem>>, vector<1x128xf32>
    %41 = vector.broadcast %40 : vector<1x128xf32> to vector<8x128xf32>
    %42 = arith.addf %39, %41 : vector<8x128xf32>
    %43 = math.tanh %42 : vector<8x128xf32>
    %44 = arith.truncf %43 : vector<8x128xf32> to vector<8x128xbf16>
    %c0_30 = arith.constant 0 : index
    %c0_31 = arith.constant 0 : index
    %45 = vector.load %arg13[%c0_30, %c0_31] : memref<128x128xbf16, #tpu.memory_space<vmem>>, vector<128x128xbf16>
    %cst_32 = arith.constant dense<0.000000e+00> : vector<8x128xf32>
    %46 = tpu.matmul %44, %45, %cst_32 {dimension_numbers = #tpu.dot_dimension_numbers<[1], [0], [0], [1], [0, 0, 1, 1], [], []>} : vector<8x128xbf16>, vector<128x128xbf16>, vector<8x128xf32> -> vector<8x128xf32>
    %c0_33 = arith.constant 0 : index
    %c0_34 = arith.constant 0 : index
    %47 = vector.load %arg14[%c0_33, %c0_34] : memref<1x128xf32, #tpu.memory_space<vmem>>, vector<1x128xf32>
    %48 = vector.broadcast %47 : vector<1x128xf32> to vector<8x128xf32>
    %49 = arith.addf %46, %48 : vector<8x128xf32>
    %50 = math.tanh %49 : vector<8x128xf32>
    %51 = arith.truncf %50 : vector<8x128xf32> to vector<8x128xbf16>
    %c0_35 = arith.constant 0 : index
    %c0_36 = arith.constant 0 : index
    %52 = vector.load %arg15[%c0_35, %c0_36] : memref<128x256xbf16, #tpu.memory_space<vmem>>, vector<128x256xbf16>
    %cst_37 = arith.constant dense<0.000000e+00> : vector<8x256xf32>
    %53 = tpu.matmul %51, %52, %cst_37 {dimension_numbers = #tpu.dot_dimension_numbers<[1], [0], [0], [1], [0, 0, 1, 1], [], []>} : vector<8x128xbf16>, vector<128x256xbf16>, vector<8x256xf32> -> vector<8x256xf32>
    %c0_38 = arith.constant 0 : index
    %c0_39 = arith.constant 0 : index
    %54 = vector.load %arg16[%c0_38, %c0_39] : memref<1x256xf32, #tpu.memory_space<vmem>>, vector<1x256xf32>
    %55 = vector.broadcast %54 : vector<1x256xf32> to vector<8x256xf32>
    %56 = arith.addf %53, %55 : vector<8x256xf32>
    %57 = math.tanh %56 : vector<8x256xf32>
    %58 = arith.truncf %57 : vector<8x256xf32> to vector<8x256xbf16>
    %c0_40 = arith.constant 0 : index
    %c0_41 = arith.constant 0 : index
    %59 = vector.load %arg17[%c0_40, %c0_41] : memref<256x784xbf16, #tpu.memory_space<vmem>>, vector<256x784xbf16>
    %cst_42 = arith.constant dense<0.000000e+00> : vector<8x784xf32>
    %60 = tpu.matmul %58, %59, %cst_42 {dimension_numbers = #tpu.dot_dimension_numbers<[1], [0], [0], [1], [0, 0, 1, 1], [], []>} : vector<8x256xbf16>, vector<256x784xbf16>, vector<8x784xf32> -> vector<8x784xf32>
    %c0_43 = arith.constant 0 : index
    %c0_44 = arith.constant 0 : index
    %61 = vector.load %arg18[%c0_43, %c0_44] : memref<1x784xf32, #tpu.memory_space<vmem>>, vector<1x784xf32>
    %62 = vector.broadcast %61 : vector<1x784xf32> to vector<8x784xf32>
    %63 = arith.addf %60, %62 : vector<8x784xf32>
    %64 = math.tanh %63 : vector<8x784xf32>
    %65 = arith.truncf %64 : vector<8x784xf32> to vector<8x784xbf16>
    %c0_45 = arith.constant 0 : index
    %c0_46 = arith.constant 0 : index
    %66 = vector.load %arg19[%c0_45, %c0_46] : memref<8x784xbf16, #tpu.memory_space<vmem>>, vector<8x784xbf16>
    tpu.vector_store %arg19[%c0_45, %c0_46], %65 {strides = array<i32>} : memref<8x784xbf16, #tpu.memory_space<vmem>>, vector<8x784xbf16>,
    return
  }
  func.func @transform_0(%arg0: i32) -> (i32, i32) {
    %c0_i32 = arith.constant 0 : i32
    %c0_i32_0 = arith.constant 0 : i32
    return %arg0, %c0_i32 : i32, i32
  }
  func.func @transform_1(%arg0: i32) -> (i32, i32) {
    %c0_i32 = arith.constant 0 : i32
    %c0_i32_0 = arith.constant 0 : i32
    return %arg0, %c0_i32 : i32, i32
  }
  func.func @transform_2(%arg0: i32) -> (i32, i32) {
    %c0_i32 = arith.constant 0 : i32
    %c0_i32_0 = arith.constant 0 : i32
    %c0_i32_1 = arith.constant 0 : i32
    return %c0_i32, %c0_i32_0 : i32, i32
  }
  func.func @transform_3(%arg0: i32) -> (i32, i32) {
    %c0_i32 = arith.constant 0 : i32
    %c0_i32_0 = arith.constant 0 : i32
    %c0_i32_1 = arith.constant 0 : i32
    return %c0_i32, %c0_i32_0 : i32, i32
  }
  func.func @transform_4(%arg0: i32) -> (i32, i32) {
    %c0_i32 = arith.constant 0 : i32
    %c0_i32_0 = arith.constant 0 : i32
    %c0_i32_1 = arith.constant 0 : i32
    return %c0_i32, %c0_i32_0 : i32, i32
  }
  func.func @transform_5(%arg0: i32) -> (i32, i32) {
    %c0_i32 = arith.constant 0 : i32
    %c0_i32_0 = arith.constant 0 : i32
    %c0_i32_1 = arith.constant 0 : i32
    return %c0_i32, %c0_i32_0 : i32, i32
  }
  func.func @transform_6(%arg0: i32) -> (i32, i32) {
    %c0_i32 = arith.constant 0 : i32
    %c0_i32_0 = arith.constant 0 : i32
    %c0_i32_1 = arith.constant 0 : i32
    return %c0_i32, %c0_i32_0 : i32, i32
  }
  func.func @transform_7(%arg0: i32) -> (i32, i32) {
    %c0_i32 = arith.constant 0 : i32
    %c0_i32_0 = arith.constant 0 : i32
    %c0_i32_1 = arith.constant 0 : i32
    return %c0_i32, %c0_i32_0 : i32, i32
  }
  func.func @transform_8(%arg0: i32) -> (i32, i32) {
    %c0_i32 = arith.constant 0 : i32
    %c0_i32_0 = arith.constant 0 : i32
    %c0_i32_1 = arith.constant 0 : i32
    return %c0_i32, %c0_i32_0 : i32, i32
  }
  func.func @transform_9(%arg0: i32) -> (i32, i32) {
    %c0_i32 = arith.constant 0 : i32
    %c0_i32_0 = arith.constant 0 : i32
    %c0_i32_1 = arith.constant 0 : i32
    return %c0_i32, %c0_i32_0 : i32, i32
  }
  func.func @transform_10(%arg0: i32) -> (i32, i32) {
    %c0_i32 = arith.constant 0 : i32
    %c0_i32_0 = arith.constant 0 : i32
    %c0_i32_1 = arith.constant 0 : i32
    return %c0_i32, %c0_i32_0 : i32, i32
  }
  func.func @transform_11(%arg0: i32) -> (i32, i32) {
    %c0_i32 = arith.constant 0 : i32
    %c0_i32_0 = arith.constant 0 : i32
    %c0_i32_1 = arith.constant 0 : i32
    return %c0_i32, %c0_i32_0 : i32, i32
  }
  func.func @transform_12(%arg0: i32) -> (i32, i32) {
    %c0_i32 = arith.constant 0 : i32
    %c0_i32_0 = arith.constant 0 : i32
    %c0_i32_1 = arith.constant 0 : i32
    return %c0_i32, %c0_i32_0 : i32, i32
  }
  func.func @transform_13(%arg0: i32) -> (i32, i32) {
    %c0_i32 = arith.constant 0 : i32
    %c0_i32_0 = arith.constant 0 : i32
    %c0_i32_1 = arith.constant 0 : i32
    return %c0_i32, %c0_i32_0 : i32, i32
  }
  func.func @transform_14(%arg0: i32) -> (i32, i32) {
    %c0_i32 = arith.constant 0 : i32
    %c0_i32_0 = arith.constant 0 : i32
    %c0_i32_1 = arith.constant 0 : i32
    return %c0_i32, %c0_i32_0 : i32, i32
  }
  func.func @transform_15(%arg0: i32) -> (i32, i32) {
    %c0_i32 = arith.constant 0 : i32
    %c0_i32_0 = arith.constant 0 : i32
    %c0_i32_1 = arith.constant 0 : i32
    return %c0_i32, %c0_i32_0 : i32, i32
  }
  func.func @transform_16(%arg0: i32) -> (i32, i32) {
    %c0_i32 = arith.constant 0 : i32
    %c0_i32_0 = arith.constant 0 : i32
    %c0_i32_1 = arith.constant 0 : i32
    return %c0_i32, %c0_i32_0 : i32, i32
  }
  func.func @transform_17(%arg0: i32) -> (i32, i32) {
    %c0_i32 = arith.constant 0 : i32
    %c0_i32_0 = arith.constant 0 : i32
    %c0_i32_1 = arith.constant 0 : i32
    return %c0_i32, %c0_i32_0 : i32, i32
  }
  func.func @transform_18(%arg0: i32) -> (i32, i32) {
    %c0_i32 = arith.constant 0 : i32
    %c0_i32_0 = arith.constant 0 : i32
    return %arg0, %c0_i32 : i32, i32
  }
  func.func @transform_19(%arg0: i32) -> (i32, i32) {
    %c0_i32 = arith.constant 0 : i32
    %c0_i32_0 = arith.constant 0 : i32
    return %arg0, %c0_i32 : i32, i32
  }
}

</mosaic_0001>

<bundles_post_ra>
// kernel: vae_forward.1
= control target key start
LH: loop header
LB: loop body
LE: loop exit
PB: predicated region body
PF: predicated region fallthrough
CT: control target
= control target key end

     0   :  { %vm676_vm0 = vcmask 130048   ;;  %vm3381_vm1 = vmmov 0   ;;  %vm1273_vm2 = vcmask 1040384   ;;  %vm1269_vm3 = vcmask 15360   ;;  %s4407_s2 = inlined_call_operand.vmem [shape: bf16[784,256], index: 2, kind: input, shape index: {}]   ;;  %s4408_s0 = inlined_call_operand.vmem [shape: f32[8,784], index: 0, kind: input, shape index: {}]   ;;  %s4409_s4 = inlined_call_operand.vmem [shape: bf16[256,128], index: 4, kind: input, shape index: {}]   ;;  %s4410_s6 = inlined_call_operand.vmem [shape: bf16[128,128], index: 6, kind: input, shape index: {}]   ;;  %s4411_s3 = inlined_call_operand.vmem [shape: f32[1,256], index: 3, kind: input, shape index: {}]   ;;  %s4412_s8 = inlined_call_operand.vmem [shape: bf16[128,128], index: 8, kind: input, shape index: {}]   ;;  %s4413_s5 = inlined_call_operand.vmem [shape: f32[1,128], index: 5, kind: input, shape index: {}]   ;;  %s4414_s7 = inlined_call_operand.vmem [shape: f32[1,128], index: 7, kind: input, shape index: {}]   ;;  %s4415_s9 = inlined_call_operand.vmem [shape: f32[1,128], index: 9, kind: input, shape index: {}]   ;;  %s4416_s19 = inlined_call_operand.vmem [shape: f32[8,128], index: 19, kind: output, shape index: {1}]   ;;  %s4417_s10 = inlined_call_operand.vmem [shape: bf16[2,128], index: 10, kind: input, shape index: {}]   ;;  %s4418_s12 = inlined_call_operand.vmem [shape: bf16[128,128], index: 12, kind: input, shape index: {}]   ;;  %s4419_s1 = inlined_call_operand.vmem [shape: f32[8,2], index: 1, kind: input, shape index: {}]   ;;  %s4420_s14 = inlined_call_operand.vmem [shape: bf16[128,256], index: 14, kind: input, shape index: {}]   ;;  %s4421_s11 = inlined_call_operand.vmem [shape: f32[1,128], index: 11, kind: input, shape index: {}]   ;;  %s4422_s16 = inlined_call_operand.vmem [shape: bf16[256,784], index: 16, kind: input, shape index: {}]   ;;  %s4423_s13 = inlined_call_operand.vmem [shape: f32[1,128], index: 13, kind: input, shape index: {}]   ;;  %s4424_s15 = inlined_call_operand.vmem [shape: f32[1,256], index: 15, kind: input, shape index: {}]   ;;  %s4425_s17 = inlined_call_operand.vmem [shape: f32[1,784], index: 17, kind: input, shape index: {}]   ;;  %s4426_s18 = inlined_call_operand.vmem [shape: bf16[8,784], index: 18, kind: output, shape index: {0}]  }
   0x1   :  { %4431 = sst [smem:[#allocation2_spill]] %s4407_s2  ;;  %vm2528_vm4 = vcmask 125952  }
   0x2   :  { %4432 = sst [smem:[#allocation3_spill]] %s4408_s0  ;;  %s4435_s20 = sld [smem:[#allocation2_spill]] }
   0x3   :  { %4433 = sst [smem:[#allocation4_spill]] %s4409_s4  ;;  %s4436_s2 = sld [smem:[#allocation3_spill]] }
   0x4   :  { %4434 = sst [smem:[#allocation5_spill]] %s4410_s6  ;;  %s4437_s21 = sld [smem:[#allocation4_spill]] }
   0x8   :  { %v2976_v0 = vld [vmem:[%s4435_s20 + $0x4] ss:$8 sps:$4 sm:$0xff]   ;;  %v2978_v1 = vld [vmem:[%s4435_s20] ss:$8 sps:$4 sm:$0xff]   ;;  %v2979_v2 = vld [vmem:[%s4435_s20 + $0x14] ss:$8 sps:$4 sm:$0xff]  }
   0x9   :  { %680 = vmatprep.subr.bf16.mxu0 %v2976_v0  ;;  %v2981_v3 = vld [vmem:[%s4435_s20 + $0x10] ss:$8 sps:$4 sm:$0xff]   ;;  %v2982_v4 = vld [vmem:[%s4435_s20 + $0x24] ss:$8 sps:$4 sm:$0xff]   ;;  %v2984_v5 = vld [vmem:[%s4435_s20 + $0x20] ss:$8 sps:$4 sm:$0xff]  }
   0xa   :  { %681 = vmatpush1.bf16.msra.mxu0 %v2978_v1  ;;  %v2985_v6 = vld [vmem:[%s4435_s20 + $0x34] ss:$8 sps:$4 sm:$0xff]   ;;  %v2987_v7 = vld [vmem:[%s4435_s20 + $0x30] ss:$8 sps:$4 sm:$0xff]   ;;  %v2988_v8 = vld [vmem:[%s4435_s20 + $0x44] ss:$8 sps:$4 sm:$0xff]  }
   0xb   :  { %682 = vmatprep.subr.bf16.mxu0 %v2979_v2  ;;  %v2990_v9 = vld [vmem:[%s4435_s20 + $0x40] ss:$8 sps:$4 sm:$0xff]   ;;  %v2991_v10 = vld [vmem:[%s4435_s20 + $0x54] ss:$8 sps:$4 sm:$0xff]   ;;  %v2993_v11 = vld [vmem:[%s4435_s20 + $0x50] ss:$8 sps:$4 sm:$0xff]  }
   0xc   :  { %v2994_v12 = vld [vmem:[%s4435_s20 + $0x64] ss:$8 sps:$4 sm:$0xff]   ;;  %v2996_v15 = vld [vmem:[%s4435_s20 + $0x60] ss:$8 sps:$4 sm:$0xff]   ;;  %v2997_v16 = vld [vmem:[%s4435_s20 + $0x74] ss:$8 sps:$4 sm:$0xff]  }
   0xd   :  { %v63_v13 = vld [vmem:[%s4436_s2 + $0x8] sm:$0xff]  ;;  %v2999_v17 = vld [vmem:[%s4435_s20 + $0x70] ss:$8 sps:$4 sm:$0xff]   ;;  %v3003_v20 = vld [vmem:[%s4435_s20 + $0x94] ss:$8 sps:$4 sm:$0xff]  }
   0xe   :  { %683 = vmatpush1.bf16.msra.mxu0 %v2981_v3  ;;  %v70_v14 = vpack.c.bf16 %v63_v13, %v63_v13  ;;  %v3000_v18 = vld [vmem:[%s4435_s20 + $0x84] ss:$8 sps:$4 sm:$0xff]   ;;  %v3002_v19 = vld [vmem:[%s4435_s20 + $0x80] ss:$8 sps:$4 sm:$0xff]   ;;  %v3005_v21 = vld [vmem:[%s4435_s20 + $0x90] ss:$8 sps:$4 sm:$0xff]  }
   0xf   :  { %684 = vmatprep.subr.bf16.mxu0 %v2982_v4  ;;  %v3006_v22 = vld [vmem:[%s4435_s20 + $0xa4] ss:$8 sps:$4 sm:$0xff]   ;;  %v3008_v23 = vld [vmem:[%s4435_s20 + $0xa0] ss:$8 sps:$4 sm:$0xff]   ;;  %v3009_v24 = vld [vmem:[%s4435_s20 + $0xb4] ss:$8 sps:$4 sm:$0xff]  }
  0x10   :  { %712 = vmatprep.mubr.bf16.mxu0 %v70_v14  ;;  %v3011_v25 = vld [vmem:[%s4435_s20 + $0xb0] ss:$8 sps:$4 sm:$0xff]   ;;  %v3012_v26 = vld [vmem:[%s4435_s20 + $0xc4] ss:$8 sps:$4 sm:$0xff]   ;;  %v3014_v27 = vld [vmem:[%s4435_s20 + $0xc0] ss:$8 sps:$4 sm:$0xff]  }
  0x11   :  { %v3015_v28 = vld [vmem:[%s4435_s20 + $0xd4] ss:$8 sps:$4 sm:$0xff]   ;;  %v3017_v29 = vld [vmem:[%s4435_s20 + $0xd0] ss:$8 sps:$4 sm:$0xff]   ;;  %v3018_v30 = vld [vmem:[%s4435_s20 + $0xe4] ss:$8 sps:$4 sm:$0xff]  }
  0x12   :  { %685 = vmatpush1.bf16.msra.mxu0 %v2984_v5  ;;  %v3020_v31 = vld [vmem:[%s4435_s20 + $0xe0] ss:$8 sps:$4 sm:$0xff]   ;;  %v3021_v32 = vld [vmem:[%s4435_s20 + $0xf4] ss:$8 sps:$4 sm:$0xff]   ;;  %v3023_v33 = vld [vmem:[%s4435_s20 + $0xf0] ss:$8 sps:$4 sm:$0xff]  }
  0x13   :  { %686 = vmatprep.subr.bf16.mxu0 %v2985_v6  ;;  %v3026_v34 = vld [vmem:[%s4435_s20 + $0x104] ss:$8 sps:$4 sm:$0xff]   ;;  %v65_v36 = vld [vmem:[%s4436_s2 + $0x18] sm:$0xff]  ;;  %v3024_v38 = vld [vmem:[%s4435_s20 + $0x100] ss:$8 sps:$4 sm:$0xff]  }
  0x14   :  { %v62_v35 = vld [vmem:[%s4436_s2] sm:$0xff]  ;;  %v72_v39 = vpack.c.bf16 %v65_v36, %v65_v36  ;;  %v3029_v40 = vld [vmem:[%s4435_s20 + $0x114] ss:$8 sps:$4 sm:$0xff]   ;;  %v3027_v41 = vld [vmem:[%s4435_s20 + $0x110] ss:$8 sps:$4 sm:$0xff]  }
  0x15   :  { %v69_v37 = vpack.c.bf16 %v62_v35, %v62_v35  ;;  %v3032_v42 = vld [vmem:[%s4435_s20 + $0x124] ss:$8 sps:$4 sm:$0xff]   ;;  %v3030_v43 = vld [vmem:[%s4435_s20 + $0x120] ss:$8 sps:$4 sm:$0xff]   ;;  %v3035_v44 = vld [vmem:[%s4435_s20 + $0x134] ss:$8 sps:$4 sm:$0xff]  }
  0x16   :  { %687 = vmatpush1.bf16.msra.mxu0 %v2987_v7  ;;  %v3033_v45 = vld [vmem:[%s4435_s20 + $0x130] ss:$8 sps:$4 sm:$0xff]   ;;  %v3038_v46 = vld [vmem:[%s4435_s20 + $0x144] ss:$8 sps:$4 sm:$0xff]   ;;  %v3036_v47 = vld [vmem:[%s4435_s20 + $0x140] ss:$8 sps:$4 sm:$0xff]  }
  0x17   :  { %688 = vmatprep.subr.bf16.mxu0 %v2988_v8  ;;  %v3041_v48 = vld [vmem:[%s4435_s20 + $0x154] ss:$8 sps:$4 sm:$0xff]   ;;  %v3123_v49 = vld [vmem:[%s4437_s21 + $0x40] sm:$0xff]   ;;  %v3039_v51 = vld [vmem:[%s4435_s20 + $0x150] ss:$8 sps:$4 sm:$0xff]  }
  0x18   :  { %v3124_v50 = vld [vmem:[%s4437_s21] sm:$0xff]   ;;  %2819 = vmatprep.subr.bf16.mxu1 %v3123_v49  ;;  %v3125_v52 = vld [vmem:[%s4437_s21 + $0x48] sm:$0xff]   ;;  %v3127_v54 = vld [vmem:[%s4437_s21 + $0x50] sm:$0xff]  }
  0x19   :  { %2820 = vmatpush3.bf16.msra.mxu1 %v3124_v50  ;;  %v3126_v53 = vld [vmem:[%s4437_s21 + $0x8] sm:$0xff]   ;;  %v3047_v57 = vld [vmem:[%s4435_s20 + $0x174] ss:$8 sps:$4 sm:$0xff]   ;;  %v3045_v61 = vld [vmem:[%s4435_s20 + $0x170] ss:$8 sps:$4 sm:$0xff]  }
  0x1a   :  { %689 = vmatpush1.bf16.msra.mxu0 %v2990_v9  ;;  %2821 = vmatprep.subr.bf16.mxu1 %v3125_v52  ;;  %v3044_v55 = vld [vmem:[%s4435_s20 + $0x164] ss:$8 sps:$4 sm:$0xff]   ;;  %v3042_v56 = vld [vmem:[%s4435_s20 + $0x160] ss:$8 sps:$4 sm:$0xff]   ;;  %v3128_v58 = vld [vmem:[%s4437_s21 + $0x10] sm:$0xff]  }
  0x1b   :  { %690 = vmatprep.subr.bf16.mxu0 %v2991_v10  ;;  %v3129_v59 = vld [vmem:[%s4437_s21 + $0x58] sm:$0xff]   ;;  %v3050_v62 = vld [vmem:[%s4435_s20 + $0x184] ss:$8 sps:$4 sm:$0xff]   ;;  %v3048_v63 = vld [vmem:[%s4435_s20 + $0x180] ss:$8 sps:$4 sm:$0xff]  }
  0x1c   :  { %v3130_v60 = vld [vmem:[%s4437_s21 + $0x18] sm:$0xff]   ;;  %v3056_v2 = vld [vmem:[%s4435_s20 + $0x1a4] ss:$8 sps:$4 sm:$0xff]   ;;  %v3054_v3 = vld [vmem:[%s4435_s20 + $0x1a0] ss:$8 sps:$4 sm:$0xff]  }
  0x1d   :  { %2822 = vmatpush3.bf16.msra.mxu1 %v3126_v53  ;;  %v3053_v0 = vld [vmem:[%s4435_s20 + $0x194] ss:$8 sps:$4 sm:$0xff]   ;;  %v3051_v1 = vld [vmem:[%s4435_s20 + $0x190] ss:$8 sps:$4 sm:$0xff]   ;;  %v3062_v6 = vld [vmem:[%s4435_s20 + $0x1c4] ss:$8 sps:$4 sm:$0xff]  }
  0x1e   :  { %691 = vmatpush1.bf16.msra.mxu0 %v2993_v11  ;;  %2823 = vmatprep.subr.bf16.mxu1 %v3127_v54  ;;  %v3059_v4 = vld [vmem:[%s4435_s20 + $0x1b4] ss:$8 sps:$4 sm:$0xff]   ;;  %v3057_v5 = vld [vmem:[%s4435_s20 + $0x1b0] ss:$8 sps:$4 sm:$0xff]   ;;  %v3060_v7 = vld [vmem:[%s4435_s20 + $0x1c0] ss:$8 sps:$4 sm:$0xff]  }
  0x1f   :  { %692 = vmatprep.subr.bf16.mxu0 %v2994_v12  ;;  %v3065_v8 = vld [vmem:[%s4435_s20 + $0x1d4] ss:$8 sps:$4 sm:$0xff]   ;;  %v3063_v9 = vld [vmem:[%s4435_s20 + $0x1d0] ss:$8 sps:$4 sm:$0xff]   ;;  %v3068_v10 = vld [vmem:[%s4435_s20 + $0x1e4] ss:$8 sps:$4 sm:$0xff]  }
  0x20   :  { %v3066_v11 = vld [vmem:[%s4435_s20 + $0x1e0] ss:$8 sps:$4 sm:$0xff]   ;;  %v3071_v12 = vld [vmem:[%s4435_s20 + $0x1f4] ss:$8 sps:$4 sm:$0xff]   ;;  %v3069_v13 = vld [vmem:[%s4435_s20 + $0x1f0] ss:$8 sps:$4 sm:$0xff]  }
  0x21   :  { %2824 = vmatpush3.bf16.msra.mxu1 %v3128_v58  ;;  %v64_v14 = vld [vmem:[%s4436_s2 + $0x10] sm:$0xff]  ;;  %v3096_v35 = vld [vmem:[%s4435_s20 + $0x280] ss:$8 sps:$4 sm:$0xff]   ;;  %v3379_v54 = vmov 0  }
  0x22   :  { %693 = vmatpush1.bf16.msra.mxu0 %v2996_v15  ;;  %2825 = vmatprep.subr.bf16.mxu1 %v3129_v59  ;;  %v3074_v15 = vld [vmem:[%s4435_s20 + $0x204] ss:$8 sps:$4 sm:$0xff]   ;;  %v3101_v36 = vld [vmem:[%s4435_s20 + $0x294] ss:$8 sps:$4 sm:$0xff]   ;;  %v3117_v49 = vld [vmem:[%s4435_s20 + $0x2f0] ss:$8 sps:$4 sm:$0xff]  }
  0x23   :  { %694 = vmatprep.subr.bf16.mxu0 %v2997_v16  ;;  %v67_v16 = vld [vmem:[%s4436_s2 + $0x28] sm:$0xff]  ;;  %v66_v50 = vld [vmem:[%s4436_s2 + $0x20] sm:$0xff] }
  0x24   :  { %v73_v52 = vpack.c.bf16 %v66_v50, %v66_v50  ;;  %v3120_v53 = vld [vmem:[%s4435_s20 + $0x300] ss:$8 sps:$4 sm:$0xff]  }
  0x25   :  { %2826 = vmatpush3.bf16.msra.mxu1 %v3130_v60  ;;  %v3132_v58 = vld [vmem:[%s4437_s21 + $0x20] sm:$0xff]   ;;  %v3133_v59 = vld [vmem:[%s4437_s21 + $0x68] sm:$0xff]  }
  0x26   :  { %695 = vmatpush1.bf16.msra.mxu0 %v2999_v17  ;;  %v71_v17 = vpack.c.bf16 %v64_v14, %v64_v14  ;;  %v3134_v60 = vld [vmem:[%s4437_s21 + $0x28] sm:$0xff]  }
  0x27   :  { %696 = vmatprep.subr.bf16.mxu0 %v3000_v18  ;;  %v3072_v18 = vld [vmem:[%s4435_s20 + $0x200] ss:$8 sps:$4 sm:$0xff]  }
  0x2a   :  { %697 = vmatpush1.bf16.msra.mxu0 %v3002_v19  ;;  %v74_v19 = vpack.c.bf16 %v67_v16, %v67_v16 }
  0x2b   :  { %698 = vmatprep.subr.bf16.mxu0 %v3003_v20  ;;  %v3077_v20 = vld [vmem:[%s4435_s20 + $0x214] ss:$8 sps:$4 sm:$0xff]  }
  0x2e   :  { %699 = vmatpush1.bf16.msra.mxu0 %v3005_v21  ;;  %v3075_v21 = vld [vmem:[%s4435_s20 + $0x210] ss:$8 sps:$4 sm:$0xff]  }
  0x2f   :  { %700 = vmatprep.subr.bf16.mxu0 %v3006_v22  ;;  %v3080_v22 = vld [vmem:[%s4435_s20 + $0x224] ss:$8 sps:$4 sm:$0xff]  }
  0x32   :  { %701 = vmatpush1.bf16.msra.mxu0 %v3008_v23  ;;  %v3078_v23 = vld [vmem:[%s4435_s20 + $0x220] ss:$8 sps:$4 sm:$0xff]  }
  0x33   :  { %702 = vmatprep.subr.bf16.mxu0 %v3009_v24  ;;  %v3083_v24 = vld [vmem:[%s4435_s20 + $0x234] ss:$8 sps:$4 sm:$0xff]  }
  0x36   :  { %703 = vmatpush1.bf16.msra.mxu0 %v3011_v25  ;;  %v3081_v25 = vld [vmem:[%s4435_s20 + $0x230] ss:$8 sps:$4 sm:$0xff]  }
  0x37   :  { %704 = vmatprep.subr.bf16.mxu0 %v3012_v26  ;;  %v3086_v26 = vld [vmem:[%s4435_s20 + $0x244] ss:$8 sps:$4 sm:$0xff]  }
  0x3a   :  { %705 = vmatpush1.bf16.msra.mxu0 %v3014_v27  ;;  %v3084_v27 = vld [vmem:[%s4435_s20 + $0x240] ss:$8 sps:$4 sm:$0xff]  }
  0x3b   :  { %706 = vmatprep.subr.bf16.mxu0 %v3015_v28  ;;  %v3089_v28 = vld [vmem:[%s4435_s20 + $0x254] ss:$8 sps:$4 sm:$0xff]  }
  0x3e   :  { %707 = vmatpush1.bf16.msra.mxu0 %v3017_v29  ;;  %v3087_v29 = vld [vmem:[%s4435_s20 + $0x250] ss:$8 sps:$4 sm:$0xff]  }
  0x3f   :  { %708 = vmatprep.subr.bf16.mxu0 %v3018_v30  ;;  %v3092_v30 = vld [vmem:[%s4435_s20 + $0x264] ss:$8 sps:$4 sm:$0xff]  }
  0x42   :  { %709 = vmatpush1.bf16.msra.mxu0 %v3020_v31  ;;  %v3090_v31 = vld [vmem:[%s4435_s20 + $0x260] ss:$8 sps:$4 sm:$0xff]  }
  0x43   :  { %710 = vmatprep.subr.bf16.mxu0 %v3021_v32  ;;  %v3095_v32 = vld [vmem:[%s4435_s20 + $0x274] ss:$8 sps:$4 sm:$0xff]  }
  0x46   :  { %711 = vmatpush1.bf16.msra.mxu0 %v3023_v33  ;;  %v3093_v33 = vld [vmem:[%s4435_s20 + $0x270] ss:$8 sps:$4 sm:$0xff]  }
  0x47   :  { %721 = vmatprep.subr.bf16.mxu0 %v3026_v34  ;;  %v3098_v34 = vld [vmem:[%s4435_s20 + $0x284] ss:$8 sps:$4 sm:$0xff]  }
  0x49   :  { %713 = vmatmul.mubr.bf16.vlgmr.msra.gmra.mrb[0].mxu0 %v69_v37  ;;  %v3099_v37 = vld [vmem:[%s4435_s20 + $0x290] ss:$8 sps:$4 sm:$0xff]  }
  0x4a   :  { %722 = vmatpush1.bf16.msra.mxu0 %v3024_v38  ;;  %753 = vmatprep.mubr.bf16.mxu0 %v72_v39  ;;  %v3104_v38 = vld [vmem:[%s4435_s20 + $0x2a4] ss:$8 sps:$4 sm:$0xff]   ;;  %v3102_v39 = vld [vmem:[%s4435_s20 + $0x2a0] ss:$8 sps:$4 sm:$0xff]  }
  0x4b   :  { %723 = vmatprep.subr.bf16.mxu0 %v3029_v40  ;;  %v3107_v40 = vld [vmem:[%s4435_s20 + $0x2b4] ss:$8 sps:$4 sm:$0xff]  }
  0x4e   :  { %724 = vmatpush1.bf16.msra.mxu0 %v3027_v41  ;;  %v3105_v41 = vld [vmem:[%s4435_s20 + $0x2b0] ss:$8 sps:$4 sm:$0xff]  }
  0x4f   :  { %725 = vmatprep.subr.bf16.mxu0 %v3032_v42  ;;  %v3110_v42 = vld [vmem:[%s4435_s20 + $0x2c4] ss:$8 sps:$4 sm:$0xff]  }
  0x52   :  { %726 = vmatpush1.bf16.msra.mxu0 %v3030_v43  ;;  %v3108_v43 = vld [vmem:[%s4435_s20 + $0x2c0] ss:$8 sps:$4 sm:$0xff]  }
  0x53   :  { %727 = vmatprep.subr.bf16.mxu0 %v3035_v44  ;;  %v3113_v44 = vld [vmem:[%s4435_s20 + $0x2d4] ss:$8 sps:$4 sm:$0xff]  }
  0x56   :  { %728 = vmatpush1.bf16.msra.mxu0 %v3033_v45  ;;  %v3111_v45 = vld [vmem:[%s4435_s20 + $0x2d0] ss:$8 sps:$4 sm:$0xff]  }
  0x57   :  { %729 = vmatprep.subr.bf16.mxu0 %v3038_v46  ;;  %v3116_v46 = vld [vmem:[%s4435_s20 + $0x2e4] ss:$8 sps:$4 sm:$0xff]  }
  0x5a   :  { %730 = vmatpush1.bf16.msra.mxu0 %v3036_v47  ;;  %v3114_v47 = vld [vmem:[%s4435_s20 + $0x2e0] ss:$8 sps:$4 sm:$0xff]  }
  0x5b   :  { %731 = vmatprep.subr.bf16.mxu0 %v3041_v48  ;;  %v3119_v48 = vld [vmem:[%s4435_s20 + $0x2f4] ss:$8 sps:$4 sm:$0xff]  }
  0x5e   :  { %732 = vmatpush1.bf16.msra.mxu0 %v3039_v51  ;;  %v3122_v51 = vld [vmem:[%s4435_s20 + $0x304] ss:$8 sps:$4 sm:$0xff]   ;;  %s4438_s20 = sld [smem:[#allocation5_spill]] }
  0x5f   :  { %733 = vmatprep.subr.bf16.mxu0 %v3044_v55  ;;  %v68_v55 = vld [vmem:[%s4436_s2 + $0x30] sm:$0xff] }
  0x62   :  { %734 = vmatpush1.bf16.msra.mxu0 %v3042_v56  ;;  %v75_v56 = vpack.c.bf16 %v68_v55, %v68_v55 }
  0x63   :  { %735 = vmatprep.subr.bf16.mxu0 %v3047_v57  ;;  %v3131_v57 = vld [vmem:[%s4437_s21 + $0x60] sm:$0xff]  }
  0x64   :  { %2827 = vmatprep.subr.bf16.mxu1 %v3131_v57 }
  0x65   :  { %2828 = vmatpush3.bf16.msra.mxu1 %v3132_v58 }
  0x66   :  { %736 = vmatpush1.bf16.msra.mxu0 %v3045_v61  ;;  %2829 = vmatprep.subr.bf16.mxu1 %v3133_v59  ;;  %v3135_v61 = vld [vmem:[%s4437_s21 + $0x70] sm:$0xff]  }
  0x67   :  { %737 = vmatprep.subr.bf16.mxu0 %v3050_v62  ;;  %v3136_v62 = vld [vmem:[%s4437_s21 + $0x30] sm:$0xff]  }
  0x69   :  { %2830 = vmatpush3.bf16.msra.mxu1 %v3134_v60 }
  0x6a   :  { %738 = vmatpush1.bf16.msra.mxu0 %v3048_v63  ;;  %2831 = vmatprep.subr.bf16.mxu1 %v3135_v61  ;;  %v3137_v63 = vld [vmem:[%s4437_s21 + $0x78] sm:$0xff]   ;;  %v1261_v61 = vld [vmem:[%s4417_s10] sm:$0x1] }
  0x6b   :  { %739 = vmatprep.subr.bf16.mxu0 %v3053_v0  ;;  %v3138_v0 = vld [vmem:[%s4437_s21 + $0x38] sm:$0xff]  }
  0x6d   :  { %2832 = vmatpush3.bf16.msra.mxu1 %v3136_v62  ;;  %v1275_v62 = vsel %vm1273_vm2, %v1261_v61, 0  ;;  %v3252_v61 = vld [vmem:[%s4422_s16 + $0x23c] ss:$28 sps:$4 sm:$0xff]  }
  0x6e   :  { %740 = vmatpush1.bf16.msra.mxu0 %v3051_v1  ;;  %2833 = vmatprep.subr.bf16.mxu1 %v3137_v63  ;;  %v3380_v1 = vmov 0.0  }
  0x6f   :  { %741 = vmatprep.subr.bf16.mxu0 %v3056_v2  ;;  %v176_v2 = vlaneseq }
  0x71   :  { %2834 = vmatpush3.bf16.msra.mxu1 %v3138_v0  ;;  %v1253_v0 = vld [vmem:[%s4419_s1] sm:$0xff] }
  0x72   :  { %742 = vmatpush1.bf16.msra.mxu0 %v3054_v3  ;;  %2892 = vmatprep.subr.bf16.mxu1 %v3380_v1  ;;  %v3848_v3 = vshrl.u32 %v176_v2, 7 }
  0x73   :  { %743 = vmatprep.subr.bf16.mxu0 %v3059_v4 }
  0x74   :  { %v3851_v4 = vsub.s32 0, %v3848_v3 }
  0x76   :  { %744 = vmatpush1.bf16.msra.mxu0 %v3057_v5  ;;  %v174_v5 = vld [vmem:[%s4411_s3] sm:$0x3] }
  0x77   :  { %745 = vmatprep.subr.bf16.mxu0 %v3062_v6  ;;  %v3857_v6 = vsub.s32 1, %v3848_v3 }
  0x7a   :  { %746 = vmatpush1.bf16.msra.mxu0 %v3060_v7  ;;  %v179_v7 = vrot.slane %v174_v5, %v3851_v4 }
  0x7b   :  { %747 = vmatprep.subr.bf16.mxu0 %v3065_v8  ;;  %v183_v8 = vrot.slane %v174_v5, %v3857_v6 }
  0x7e   :  { %748 = vmatpush1.bf16.msra.mxu0 %v3063_v9 }
  0x7f   :  { %749 = vmatprep.subr.bf16.mxu0 %v3068_v10 }
  0x82   :  { %750 = vmatpush1.bf16.msra.mxu0 %v3066_v11 }
  0x83   :  { %751 = vmatprep.subr.bf16.mxu0 %v3071_v12 }
  0x86   :  { %752 = vmatpush1.bf16.msra.mxu0 %v3069_v13 }
  0x87   :  { %762 = vmatprep.subr.bf16.mxu0 %v3074_v15 }
  0x89   :  { %754 = vmatmul.mubr.bf16.vlgmr.msra.gmra.mrb[0].mxu0 %v71_v17 }
  0x8a   :  { %763 = vmatpush1.bf16.msra.mxu0 %v3072_v18  ;;  %794 = vmatprep.mubr.bf16.mxu0 %v74_v19  ;;  %v3139_v18 = vld [vmem:[%s4438_s20] sm:$0xff]  }
  0x8b   :  { %764 = vmatprep.subr.bf16.mxu0 %v3077_v20  ;;  %v3140_v20 = vld [vmem:[%s4438_s20 + $0x8] sm:$0xff]  }
  0x8e   :  { %765 = vmatpush1.bf16.msra.mxu0 %v3075_v21  ;;  %v3141_v21 = vld [vmem:[%s4438_s20 + $0x10] sm:$0xff]  }
  0x8f   :  { %766 = vmatprep.subr.bf16.mxu0 %v3080_v22  ;;  %v3142_v22 = vld [vmem:[%s4438_s20 + $0x18] sm:$0xff]  }
  0x92   :  { %767 = vmatpush1.bf16.msra.mxu0 %v3078_v23  ;;  %v3143_v23 = vld [vmem:[%s4438_s20 + $0x20] sm:$0xff]  }
  0x93   :  { %768 = vmatprep.subr.bf16.mxu0 %v3083_v24  ;;  %v3144_v24 = vld [vmem:[%s4438_s20 + $0x28] sm:$0xff]  }
  0x96   :  { %769 = vmatpush1.bf16.msra.mxu0 %v3081_v25  ;;  %v3145_v25 = vld [vmem:[%s4438_s20 + $0x30] sm:$0xff]  }
  0x97   :  { %770 = vmatprep.subr.bf16.mxu0 %v3086_v26  ;;  %v3146_v26 = vld [vmem:[%s4438_s20 + $0x38] sm:$0xff]  }
  0x9a   :  { %771 = vmatpush1.bf16.msra.mxu0 %v3084_v27 }
  0x9b   :  { %772 = vmatprep.subr.bf16.mxu0 %v3089_v28  ;;  %v2637_v28 = vld [vmem:[%s4413_s5] ss:$0 sm:$0xff] }
  0x9e   :  { %773 = vmatpush1.bf16.msra.mxu0 %v3087_v29 }
  0x9f   :  { %774 = vmatprep.subr.bf16.mxu0 %v3092_v30 }
  0xa2   :  { %775 = vmatpush1.bf16.msra.mxu0 %v3090_v31 }
  0xa3   :  { %776 = vmatprep.subr.bf16.mxu0 %v3095_v32 }
  0xa6   :  { %777 = vmatpush1.bf16.msra.mxu0 %v3093_v33 }
  0xa7   :  { %778 = vmatprep.subr.bf16.mxu0 %v3098_v34 }
  0xaa   :  { %779 = vmatpush1.bf16.msra.mxu0 %v3096_v35  ;;  %v3147_v35 = vld [vmem:[%s4412_s8] sm:$0xff]  }
  0xab   :  { %780 = vmatprep.subr.bf16.mxu0 %v3101_v36 }
  0xae   :  { %781 = vmatpush1.bf16.msra.mxu0 %v3099_v37  ;;  %v3148_v37 = vld [vmem:[%s4412_s8 + $0x8] sm:$0xff]  }
  0xaf   :  { %782 = vmatprep.subr.bf16.mxu0 %v3104_v38  ;;  %v3149_v38 = vld [vmem:[%s4412_s8 + $0x10] sm:$0xff]  }
  0xb2   :  { %783 = vmatpush1.bf16.msra.mxu0 %v3102_v39  ;;  %v3150_v39 = vld [vmem:[%s4412_s8 + $0x18] sm:$0xff]  }
  0xb3   :  { %784 = vmatprep.subr.bf16.mxu0 %v3107_v40  ;;  %v3151_v40 = vld [vmem:[%s4412_s8 + $0x20] sm:$0xff]  }
  0xb6   :  { %785 = vmatpush1.bf16.msra.mxu0 %v3105_v41  ;;  %v3152_v41 = vld [vmem:[%s4412_s8 + $0x28] sm:$0xff]  }
  0xb7   :  { %786 = vmatprep.subr.bf16.mxu0 %v3110_v42  ;;  %v3153_v42 = vld [vmem:[%s4412_s8 + $0x30] sm:$0xff]  }
  0xba   :  { %787 = vmatpush1.bf16.msra.mxu0 %v3108_v43  ;;  %v3154_v43 = vld [vmem:[%s4412_s8 + $0x38] sm:$0xff]  }
  0xbb   :  { %788 = vmatprep.subr.bf16.mxu0 %v3113_v44  ;;  %v2654_v44 = vld [vmem:[%s4414_s7] ss:$0 sm:$0xff] }
  0xbe   :  { %789 = vmatpush1.bf16.msra.mxu0 %v3111_v45 }
  0xbf   :  { %790 = vmatprep.subr.bf16.mxu0 %v3116_v46 }
  0xc2   :  { %791 = vmatpush1.bf16.msra.mxu0 %v3114_v47 }
  0xc3   :  { %792 = vmatprep.subr.bf16.mxu0 %v3119_v48 }
  0xc6   :  { %793 = vmatpush1.bf16.msra.mxu0 %v3117_v49 }
  0xc7   :  { %803 = vmatprep.subr.bf16.mxu0 %v3122_v51 }
  0xc9   :  { %795 = vmatmul.mubr.bf16.vlgmr.msra.gmra.mrb[0].mxu0 %v73_v52  ;;  %v2663_v52 = vld [vmem:[%s4415_s9] ss:$0 sm:$0xff]  ;;  %s3382_s9 = smov 126  }
  0xca   :  { %804 = vmatpush1.bf16.msra.mxu0 %v3120_v53  ;;  %835 = vmatprep.mubr.bf16.mxu0 %v3379_v54 }
  0xd5   :  { %2636 = vmatmul.mubr.msk.bf16.vlgmr.msra.gmra.mrb[0].mxu0 %vm676_vm0, %v75_v56 }
 0x1a8   :  { %v837_v9 = vpop.f32.mrb[0].mxu0 }
 0x1a9   :  { %v2958_v10 = vadd.f32 %v837_v9, %v179_v7  ;;  %v839_v11 = vpop.f32.mrb[1].mxu0 }
 0x1aa   :  { %v2959_v12 = vadd.f32 %v839_v11, %v183_v8  ;;  %v841_v13 = vpop.f32.mrb[2].mxu0  ;;  %v3155_v8 = vld [vmem:[%s4418_s12] sm:$0xff]   ;;  %v3157_v11 = vld [vmem:[%s4418_s12 + $0x10] sm:$0xff]  }
 0x1ab   :  { %3347 = vtanh.f32 %v2958_v10  ;;  %v842_v14 = vpop.f32.mrb[3].mxu0  ;;  %v3156_v10 = vld [vmem:[%s4418_s12 + $0x8] sm:$0xff]   ;;  %v3159_v13 = vld [vmem:[%s4418_s12 + $0x20] sm:$0xff]  }
 0x1ac   :  { %3349 = vtanh.f32 %v2959_v12  ;;  %v3158_v12 = vld [vmem:[%s4418_s12 + $0x18] sm:$0xff]   ;;  %v3160_v14 = vld [vmem:[%s4418_s12 + $0x28] sm:$0xff]  }
 0x1b5   :  { %v3348_v15 = vpop.eup %3347 }
 0x1b6   :  { %v3350_v16 = vpop.eup %3349  ;;  %v846_v19 = vpack.c.bf16 %v3348_v15, %v3348_v15  ;;  %v3161_v15 = vld [vmem:[%s4418_s12 + $0x30] sm:$0xff]  }
 0x1b7   :  { %v847_v17 = vpack.c.bf16 %v3350_v16, %v3350_v16  ;;  %v3162_v16 = vld [vmem:[%s4418_s12 + $0x38] sm:$0xff]  }
 0x1b9   :  { %1015 = vmatprep.mubr.bf16.mxu1 %v847_v17  ;;  %v3165_v17 = vld [vmem:[%s4420_s14 + $0x4] ss:$8 sps:$4 sm:$0xff]  }
 0x1ba   :  { %1016 = vmatmul.mubr.bf16.vlgmr.msra.gmra.mrb[0].mxu1 %v846_v19 }
 0x1bb   :  { %2893 = vmatpush3.bf16.msra.mxu1 %v3139_v18  ;;  %2908 = vmatprep.mubr.msk.bf16.mxu1 %vm3381_vm1, %v3380_v1  ;;  %v2672_v18 = vld [vmem:[%s4421_s11] ss:$0 sm:$0xff] }
 0x1bc   :  { %2894 = vmatprep.subr.bf16.mxu1 %v3380_v1 }
 0x1bf   :  { %2895 = vmatpush3.bf16.msra.mxu1 %v3140_v20 }
 0x1c0   :  { %2896 = vmatprep.subr.bf16.mxu1 %v3380_v1 }
 0x1c3   :  { %2897 = vmatpush3.bf16.msra.mxu1 %v3141_v21 }
 0x1c4   :  { %2898 = vmatprep.subr.bf16.mxu1 %v3380_v1 }
 0x1c7   :  { %2899 = vmatpush3.bf16.msra.mxu1 %v3142_v22 }
 0x1c8   :  { %2900 = vmatprep.subr.bf16.mxu1 %v3380_v1 }
 0x1cb   :  { %2901 = vmatpush3.bf16.msra.mxu1 %v3143_v23 }
 0x1cc   :  { %2902 = vmatprep.subr.bf16.mxu1 %v3380_v1 }
 0x1cf   :  { %2903 = vmatpush3.bf16.msra.mxu1 %v3144_v24  ;;  %v3163_v24 = vld [vmem:[%s4420_s14] ss:$8 sps:$4 sm:$0xff]  }
 0x1d0   :  { %2904 = vmatprep.subr.bf16.mxu1 %v3380_v1 }
 0x1d3   :  { %2905 = vmatpush3.bf16.msra.mxu1 %v3145_v25 }
 0x1d4   :  { %2906 = vmatprep.subr.bf16.mxu1 %v3380_v1 }
 0x1d7   :  { %2907 = vmatpush3.bf16.msra.mxu1 %v3146_v26  ;;  %v3168_v26 = vld [vmem:[%s4420_s14 + $0x14] ss:$8 sps:$4 sm:$0xff]  }
 0x1d8   :  { %2912 = vmatprep.subr.bf16.mxu1 %v3380_v1 }
 0x28d   :  { %v2835_v27 = vpop.f32.mrb[0].mxu1 }
 0x28e   :  { %v2836_v29 = vpop.f32.mrb[1].mxu1 }
 0x28f   :  { %v2837_v30 = vadd.f32 %v2836_v29, %v2835_v27  ;;  %v2838_v31 = vpop.f32.mrb[2].mxu1  ;;  %v3166_v27 = vld [vmem:[%s4420_s14 + $0x10] ss:$8 sps:$4 sm:$0xff]   ;;  %v3169_v29 = vld [vmem:[%s4420_s14 + $0x20] ss:$8 sps:$4 sm:$0xff]  }
 0x290   :  { %v2839_v32 = vpop.f32.mrb[3].mxu1  ;;  %v3177_v31 = vld [vmem:[%s4420_s14 + $0x44] ss:$8 sps:$4 sm:$0xff]  }
 0x291   :  { %v1018_v33 = vadd.f32 %v2837_v30, %v2637_v28  ;;  %v3171_v28 = vld [vmem:[%s4420_s14 + $0x24] ss:$8 sps:$4 sm:$0xff]   ;;  %v3174_v30 = vld [vmem:[%s4420_s14 + $0x34] ss:$8 sps:$4 sm:$0xff]   ;;  %v3175_v32 = vld [vmem:[%s4420_s14 + $0x40] ss:$8 sps:$4 sm:$0xff]  }
 0x293   :  { %3351 = vtanh.f32 %v1018_v33  ;;  %v3180_v33 = vld [vmem:[%s4420_s14 + $0x54] ss:$8 sps:$4 sm:$0xff]  }
 0x29d   :  { %v3352_v34 = vpop.eup %3351 }
 0x29e   :  { %v1024_v36 = vpack.c.bf16 %v3352_v34, %v3352_v34  ;;  %v3178_v34 = vld [vmem:[%s4420_s14 + $0x50] ss:$8 sps:$4 sm:$0xff]  }
 0x2a0   :  { %2909 = vmatmul.mubr.bf16.vlgmr.msra.gmra.mrb[4].mxu1 %v1024_v36  ;;  %v3181_v36 = vld [vmem:[%s4420_s14 + $0x60] ss:$8 sps:$4 sm:$0xff]  }
 0x2a1   :  { %2913 = vmatpush3.bf16.msra.mxu1 %v3147_v35  ;;  %2928 = vmatprep.mubr.msk.bf16.mxu1 %vm3381_vm1, %v3380_v1  ;;  %v3183_v35 = vld [vmem:[%s4420_s14 + $0x64] ss:$8 sps:$4 sm:$0xff]  }
 0x2a2   :  { %2914 = vmatprep.subr.bf16.mxu1 %v3380_v1 }
 0x2a5   :  { %2915 = vmatpush3.bf16.msra.mxu1 %v3148_v37  ;;  %v3186_v37 = vld [vmem:[%s4420_s14 + $0x74] ss:$8 sps:$4 sm:$0xff]  }
 0x2a6   :  { %2916 = vmatprep.subr.bf16.mxu1 %v3380_v1 }
 0x2a9   :  { %2917 = vmatpush3.bf16.msra.mxu1 %v3149_v38  ;;  %v3184_v38 = vld [vmem:[%s4420_s14 + $0x70] ss:$8 sps:$4 sm:$0xff]  }
 0x2aa   :  { %2918 = vmatprep.subr.bf16.mxu1 %v3380_v1 }
 0x2ad   :  { %2919 = vmatpush3.bf16.msra.mxu1 %v3150_v39  ;;  %v3189_v39 = vld [vmem:[%s4422_s16 + $0x4] ss:$28 sps:$4 sm:$0xff]  }
 0x2ae   :  { %2920 = vmatprep.subr.bf16.mxu1 %v3380_v1 }
 0x2b1   :  { %2921 = vmatpush3.bf16.msra.mxu1 %v3151_v40  ;;  %v3190_v40 = vld [vmem:[%s4422_s16 + $0x8] ss:$28 sps:$4 sm:$0xff]  }
 0x2b2   :  { %2922 = vmatprep.subr.bf16.mxu1 %v3380_v1 }
 0x2b5   :  { %2923 = vmatpush3.bf16.msra.mxu1 %v3152_v41  ;;  %v3192_v41 = vld [vmem:[%s4422_s16 + $0xc] ss:$28 sps:$4 sm:$0xff]  }
 0x2b6   :  { %2924 = vmatprep.subr.bf16.mxu1 %v3380_v1  ;;  %2367 = vmatprep.subr.bf16.mxu0 %v3192_v41  ;;  %v3268_v41 = vld [vmem:[%s4422_s16 + $0x2e0] ss:$28 sps:$4 sm:$0xff]  }
 0x2b7   :  { %2368 = vmatpush1.bf16.msra.mxu0 %v3190_v40  ;;  %v3265_v40 = vld [vmem:[%s4422_s16 + $0x2d8] ss:$28 sps:$4 sm:$0xff]  }
 0x2b9   :  { %2925 = vmatpush3.bf16.msra.mxu1 %v3153_v42  ;;  %v3196_v42 = vld [vmem:[%s4422_s16 + $0x40] ss:$28 sps:$4 sm:$0xff]  }
 0x2ba   :  { %2926 = vmatprep.subr.bf16.mxu1 %v3380_v1 }
 0x2bd   :  { %2927 = vmatpush3.bf16.msra.mxu1 %v3154_v43  ;;  %v3198_v43 = vld [vmem:[%s4422_s16 + $0x44] ss:$28 sps:$4 sm:$0xff]  }
 0x2be   :  { %2932 = vmatprep.subr.bf16.mxu1 %v3380_v1  ;;  %2369 = vmatprep.subr.bf16.mxu0 %v3198_v43  ;;  %v3276_v43 = vld [vmem:[%s4422_s16 + $0x31c] ss:$28 sps:$4 sm:$0xff]  }
 0x2bf   :  { %2370 = vmatpush1.bf16.msra.mxu0 %v3196_v42  ;;  %v3273_v42 = vld [vmem:[%s4422_s16 + $0x314] ss:$28 sps:$4 sm:$0xff]  }
 0x373   :  { %v1130_v45 = vpop.f32.mrb[4].mxu1 }
 0x374   :  { %v1131_v46 = vadd.f32 %v2654_v44, %v1130_v45  ;;  %v2910_v47 = vpop.f32.mrb[5].mxu1  ;;  %v3204_v44 = vld [vmem:[%s4422_s16 + $0x7c] ss:$28 sps:$4 sm:$0xff]  }
 0x375   :  { %v1133_v48 = vpop.f32.mrb[6].mxu1  ;;  %v3202_v45 = vld [vmem:[%s4422_s16 + $0x78] ss:$28 sps:$4 sm:$0xff]   ;;  %2371 = vmatprep.subr.bf16.mxu0 %v3204_v44  ;;  %v3208_v47 = vld [vmem:[%s4422_s16 + $0xb0] ss:$28 sps:$4 sm:$0xff]  }
 0x376   :  { %3353 = vtanh.f32 %v1131_v46  ;;  %v2911_v49 = vpop.f32.mrb[7].mxu1  ;;  %v3210_v46 = vld [vmem:[%s4422_s16 + $0xb4] ss:$28 sps:$4 sm:$0xff]   ;;  %2372 = vmatpush1.bf16.msra.mxu0 %v3202_v45  ;;  %v3216_v48 = vld [vmem:[%s4422_s16 + $0xec] ss:$28 sps:$4 sm:$0xff]  }
 0x377   :  { %2373 = vmatprep.subr.bf16.mxu0 %v3210_v46  ;;  %v3214_v49 = vld [vmem:[%s4422_s16 + $0xe8] ss:$28 sps:$4 sm:$0xff]   ;;  %v3271_v44 = vld [vmem:[%s4422_s16 + $0x310] ss:$28 sps:$4 sm:$0xff]   ;;  %v3274_v45 = vld [vmem:[%s4422_s16 + $0x318] ss:$28 sps:$4 sm:$0xff]  }
 0x378   :  { %v3279_v46 = vld [vmem:[%s4422_s16 + $0x34c] ss:$28 sps:$4 sm:$0xff]  }
 0x37a   :  { %2374 = vmatpush1.bf16.msra.mxu0 %v3208_v47  ;;  %v3282_v47 = vld [vmem:[%s4422_s16 + $0x354] ss:$28 sps:$4 sm:$0xff]  }
 0x37b   :  { %2375 = vmatprep.subr.bf16.mxu0 %v3216_v48  ;;  %v3277_v48 = vld [vmem:[%s4422_s16 + $0x348] ss:$28 sps:$4 sm:$0xff]  }
 0x37e   :  { %2376 = vmatpush1.bf16.msra.mxu0 %v3214_v49  ;;  %v3280_v49 = vld [vmem:[%s4422_s16 + $0x350] ss:$28 sps:$4 sm:$0xff]  }
 0x380   :  { %v3354_v50 = vpop.eup %3353 }
 0x381   :  { %v1137_v51 = vpack.c.bf16 %v3354_v50, %v3354_v50  ;;  %v3222_v50 = vld [vmem:[%s4422_s16 + $0x124] ss:$28 sps:$4 sm:$0xff]  }
 0x382   :  { %2377 = vmatprep.subr.bf16.mxu0 %v3222_v50  ;;  %v3285_v50 = vld [vmem:[%s4422_s16 + $0x14] ss:$28 sps:$4 sm:$0xff]  }
 0x383   :  { %2929 = vmatmul.mubr.bf16.vlgmr.msra.gmra.mrb[8].mxu1 %v1137_v51  ;;  %v3220_v51 = vld [vmem:[%s4422_s16 + $0x120] ss:$28 sps:$4 sm:$0xff]  }
 0x384   :  { %2934 = vmatprep.mubr.msk.bf16.mxu1 %vm3381_vm1, %v3380_v1  ;;  %2933 = vmatpush3.bf16.msra.mxu1 %v1275_v62  ;;  %v3250_v62 = vld [vmem:[%s4422_s16 + $0x238] ss:$28 sps:$4 sm:$0xff]  }
 0x385   :  { %2938 = vmatprep.subr.bf16.mxu1 %v3380_v1  ;;  %2378 = vmatpush1.bf16.msra.mxu0 %v3220_v51  ;;  %v3286_v51 = vld [vmem:[%s4422_s16 + $0x1d8] ss:$28 sps:$4 sm:$0xff]  }
 0x456   :  { %v1243_v53 = vpop.f32.mrb[8].mxu1 }
 0x457   :  { %v1244_v55 = vadd.f32 %v2663_v52, %v1243_v53  ;;  %v2930_v56 = vpop.f32.mrb[9].mxu1  ;;  %v3228_v52 = vld [vmem:[%s4422_s16 + $0x15c] ss:$28 sps:$4 sm:$0xff]  }
 0x458   :  { %v1246_v57 = vpop.f32.mrb[10].mxu1  ;;  %v3226_v53 = vld [vmem:[%s4422_s16 + $0x158] ss:$28 sps:$4 sm:$0xff]   ;;  %2379 = vmatprep.subr.bf16.mxu0 %v3228_v52  ;;  %v3232_v56 = vld [vmem:[%s4422_s16 + $0x190] ss:$28 sps:$4 sm:$0xff]  }
 0x459   :  { %1249 = vst [vmem:[%s4416_s19] sm:$0xff] %v1244_v55  ;;  %v1250_v58 = vmul.f32 0.5, %v1244_v55  ;;  %v2931_v59 = vpop.f32.mrb[11].mxu1  ;;  %2380 = vmatpush1.bf16.msra.mxu0 %v3226_v53  ;;  %v3240_v57 = vld [vmem:[%s4422_s16 + $0x1cc] ss:$28 sps:$4 sm:$0xff]   ;;  %v1448_v52 = vld [vmem:[%s4424_s15] sm:$0x3] }
 0x45a   :  { %v3246_v59 = vld [vmem:[%s4422_s16 + $0x204] ss:$28 sps:$4 sm:$0xff]   ;;  %v1453_v53 = vrot.slane %v1448_v52, %v3851_v4 }
 0x45b   :  { %v1251_v60 = vmul.f32 1.442695, %v1250_v58  ;;  %v3238_v58 = vld [vmem:[%s4422_s16 + $0x1c8] ss:$28 sps:$4 sm:$0xff]  }
 0x45d   :  { %3355 = vpow2.f32 %v1251_v60  ;;  %v3244_v60 = vld [vmem:[%s4422_s16 + $0x200] ss:$28 sps:$4 sm:$0xff]  }
 0x467   :  { %v3356_v63 = vpop.eup %3355 }
 0x468   :  { %1255 = vrot.lane.b32.xlu0 %v3356_v63, %s3382_s9  ;;  %v3258_v63 = vld [vmem:[%s4422_s16 + $0x274] ss:$28 sps:$4 sm:$0xff]  }
 0x4da   :  { %v1256_v2 = vpop.permute.xlu0 %1255 }
 0x4db   :  { %v1258_v5 = vmul.f32 %v1256_v2, %v1253_v0  ;;  %v3256_v0 = vld [vmem:[%s4422_s16 + $0x270] ss:$28 sps:$4 sm:$0xff]   ;;  %v2674_v2 = vld [vmem:[%s4423_s13] ss:$0 sm:$0xff] }
 0x4dd   :  { %v1259_v7 = vadd.f32 %v1258_v5, %v1244_v55  ;;  %v3234_v55 = vld [vmem:[%s4422_s16 + $0x194] ss:$28 sps:$4 sm:$0xff]  }
 0x4de   :  { %2381 = vmatprep.subr.bf16.mxu0 %v3234_v55  ;;  %v1457_v55 = vrot.slane %v1448_v52, %v3857_v6  ;;  %v1729_v52 = vsub.s32 3, %v3848_v3 }
 0x4df   :  { %v1260_v9 = vpack.c.bf16 %v1259_v7, %v1259_v7  ;;  %2382 = vmatpush1.bf16.msra.mxu0 %v3232_v56 }
 0x4e0   :  { %2383 = vmatprep.subr.bf16.mxu0 %v3240_v57 }
 0x4e1   :  { %2935 = vmatmul.mubr.msk.bf16.vlgmr.msra.gmra.mrb[12].mxu1 %vm1269_vm3, %v1260_v9 }
 0x4e2   :  { %2939 = vmatpush3.bf16.msra.mxu1 %v3155_v8  ;;  %2954 = vmatprep.mubr.msk.bf16.mxu1 %vm3381_vm1, %v3380_v1 }
 0x4e3   :  { %2940 = vmatprep.subr.bf16.mxu1 %v3380_v1  ;;  %2384 = vmatpush1.bf16.msra.mxu0 %v3238_v58 }
 0x4e4   :  { %2385 = vmatprep.subr.bf16.mxu0 %v3246_v59 }
 0x4e6   :  { %2941 = vmatpush3.bf16.msra.mxu1 %v3156_v10 }
 0x4e7   :  { %2942 = vmatprep.subr.bf16.mxu1 %v3380_v1  ;;  %2386 = vmatpush1.bf16.msra.mxu0 %v3244_v60 }
 0x4e8   :  { %2387 = vmatprep.subr.bf16.mxu0 %v3252_v61 }
 0x4ea   :  { %2943 = vmatpush3.bf16.msra.mxu1 %v3157_v11 }
 0x4eb   :  { %2944 = vmatprep.subr.bf16.mxu1 %v3380_v1  ;;  %2388 = vmatpush1.bf16.msra.mxu0 %v3250_v62 }
 0x4ec   :  { %2389 = vmatprep.subr.bf16.mxu0 %v3258_v63 }
 0x4ee   :  { %2945 = vmatpush3.bf16.msra.mxu1 %v3158_v12  ;;  %v3187_v12 = vld [vmem:[%s4422_s16] ss:$28 sps:$4 sm:$0xff]  }
 0x4ef   :  { %2946 = vmatprep.subr.bf16.mxu1 %v3380_v1  ;;  %2390 = vmatpush1.bf16.msra.mxu0 %v3256_v0 }
 0x4f2   :  { %2947 = vmatpush3.bf16.msra.mxu1 %v3159_v13 }
 0x4f3   :  { %2948 = vmatprep.subr.bf16.mxu1 %v3380_v1 }
 0x4f6   :  { %2949 = vmatpush3.bf16.msra.mxu1 %v3160_v14  ;;  %v3195_v14 = vld [vmem:[%s4422_s16 + $0x3c] ss:$28 sps:$4 sm:$0xff]  }
 0x4f7   :  { %2950 = vmatprep.subr.bf16.mxu1 %v3380_v1 }
 0x4fa   :  { %2951 = vmatpush3.bf16.msra.mxu1 %v3161_v15  ;;  %v3193_v15 = vld [vmem:[%s4422_s16 + $0x38] ss:$28 sps:$4 sm:$0xff]  }
 0x4fb   :  { %2952 = vmatprep.subr.bf16.mxu1 %v3380_v1 }
 0x4fe   :  { %2953 = vmatpush3.bf16.msra.mxu1 %v3162_v16  ;;  %v3201_v16 = vld [vmem:[%s4422_s16 + $0x74] ss:$28 sps:$4 sm:$0xff]  }
 0x4ff   :  { %1540 = vmatprep.subr.bf16.mxu1 %v3165_v17  ;;  %v3199_v17 = vld [vmem:[%s4422_s16 + $0x70] ss:$28 sps:$4 sm:$0xff]  }
 0x5b4   :  { %v1311_v19 = vpop.f32.mrb[12].mxu1 }
 0x5b5   :  { %v1312_v20 = vadd.f32 %v2672_v18, %v1311_v19  ;;  %v2936_v21 = vpop.f32.mrb[13].mxu1  ;;  %v3207_v18 = vld [vmem:[%s4422_s16 + $0xac] ss:$28 sps:$4 sm:$0xff]  }
 0x5b6   :  { %v1314_v22 = vpop.f32.mrb[14].mxu1  ;;  %v3205_v19 = vld [vmem:[%s4422_s16 + $0xa8] ss:$28 sps:$4 sm:$0xff]   ;;  %v3211_v21 = vld [vmem:[%s4422_s16 + $0xe0] ss:$28 sps:$4 sm:$0xff]  }
 0x5b7   :  { %3357 = vtanh.f32 %v1312_v20  ;;  %v2937_v1 = vpop.f32.mrb[15].mxu1  ;;  %v3213_v20 = vld [vmem:[%s4422_s16 + $0xe4] ss:$28 sps:$4 sm:$0xff]   ;;  %v3219_v22 = vld [vmem:[%s4422_s16 + $0x11c] ss:$28 sps:$4 sm:$0xff]  }
 0x5b8   :  { %v3217_v1 = vld [vmem:[%s4422_s16 + $0x118] ss:$28 sps:$4 sm:$0xff]  }
 0x5c1   :  { %v3358_v23 = vpop.eup %3357 }
 0x5c2   :  { %v1318_v25 = vpack.c.bf16 %v3358_v23, %v3358_v23  ;;  %v3225_v23 = vld [vmem:[%s4422_s16 + $0x154] ss:$28 sps:$4 sm:$0xff]  }
 0x5c4   :  { %2955 = vmatmul.mubr.bf16.vlgmr.msra.gmra.mrb[16].mxu1 %v1318_v25  ;;  %v3231_v25 = vld [vmem:[%s4422_s16 + $0x18c] ss:$28 sps:$4 sm:$0xff]  }
 0x5c5   :  { %1541 = vmatpush1.bf16.msra.mxu1 %v3163_v24  ;;  %1572 = vmatprep.mubr.bf16.mxu1 %v3379_v54  ;;  %v3172_v54 = vld [vmem:[%s4420_s14 + $0x30] ss:$8 sps:$4 sm:$0xff]  }
 0x5c6   :  { %1542 = vmatprep.subr.bf16.mxu1 %v3168_v26  ;;  %v3223_v24 = vld [vmem:[%s4422_s16 + $0x150] ss:$28 sps:$4 sm:$0xff]   ;;  %v3229_v26 = vld [vmem:[%s4422_s16 + $0x188] ss:$28 sps:$4 sm:$0xff]  }
 0x5c9   :  { %1543 = vmatpush1.bf16.msra.mxu1 %v3166_v27  ;;  %v3237_v27 = vld [vmem:[%s4422_s16 + $0x1c4] ss:$28 sps:$4 sm:$0xff]  }
 0x5ca   :  { %1544 = vmatprep.subr.bf16.mxu1 %v3171_v28  ;;  %v3235_v28 = vld [vmem:[%s4422_s16 + $0x1c0] ss:$28 sps:$4 sm:$0xff]  }
 0x5cd   :  { %1545 = vmatpush1.bf16.msra.mxu1 %v3169_v29  ;;  %v3243_v29 = vld [vmem:[%s4422_s16 + $0x1fc] ss:$28 sps:$4 sm:$0xff]  }
 0x5ce   :  { %1546 = vmatprep.subr.bf16.mxu1 %v3174_v30  ;;  %v3241_v30 = vld [vmem:[%s4422_s16 + $0x1f8] ss:$28 sps:$4 sm:$0xff]  }
 0x5d1   :  { %1547 = vmatpush1.bf16.msra.mxu1 %v3172_v54  ;;  %v3249_v54 = vld [vmem:[%s4422_s16 + $0x234] ss:$28 sps:$4 sm:$0xff]  }
 0x5d2   :  { %1548 = vmatprep.subr.bf16.mxu1 %v3177_v31  ;;  %v3247_v31 = vld [vmem:[%s4422_s16 + $0x230] ss:$28 sps:$4 sm:$0xff]  }
 0x5d5   :  { %1549 = vmatpush1.bf16.msra.mxu1 %v3175_v32  ;;  %v3255_v32 = vld [vmem:[%s4422_s16 + $0x26c] ss:$28 sps:$4 sm:$0xff]  }
 0x5d6   :  { %1550 = vmatprep.subr.bf16.mxu1 %v3180_v33  ;;  %v3253_v33 = vld [vmem:[%s4422_s16 + $0x268] ss:$28 sps:$4 sm:$0xff]  }
 0x5d9   :  { %1551 = vmatpush1.bf16.msra.mxu1 %v3178_v34  ;;  %v3261_v34 = vld [vmem:[%s4422_s16 + $0x2a4] ss:$28 sps:$4 sm:$0xff]  }
 0x5da   :  { %1552 = vmatprep.subr.bf16.mxu1 %v3183_v35  ;;  %v3264_v35 = vld [vmem:[%s4422_s16 + $0x2ac] ss:$28 sps:$4 sm:$0xff]  }
 0x5db   :  { %2391 = vmatprep.subr.bf16.mxu0 %v3264_v35  ;;  %v3323_v35 = vld [vmem:[%s4422_s16 + $0x1d0] ss:$28 sps:$4 sm:$0xff]  }
 0x5dd   :  { %1553 = vmatpush1.bf16.msra.mxu1 %v3181_v36  ;;  %v3259_v36 = vld [vmem:[%s4422_s16 + $0x2a0] ss:$28 sps:$4 sm:$0xff]  }
 0x5de   :  { %1554 = vmatprep.subr.bf16.mxu1 %v3186_v37  ;;  %v3262_v37 = vld [vmem:[%s4422_s16 + $0x2a8] ss:$28 sps:$4 sm:$0xff]  }
 0x5df   :  { %2392 = vmatpush1.bf16.msra.mxu0 %v3262_v37  ;;  %v3326_v37 = vld [vmem:[%s4422_s16 + $0x208] ss:$28 sps:$4 sm:$0xff]  }
 0x5e1   :  { %1555 = vmatpush1.bf16.msra.mxu1 %v3184_v38  ;;  %v3267_v38 = vld [vmem:[%s4422_s16 + $0x2dc] ss:$28 sps:$4 sm:$0xff]  }
 0x5e2   :  { %2326 = vmatprep.subr.bf16.mxu1 %v3189_v39  ;;  %v3270_v39 = vld [vmem:[%s4422_s16 + $0x2e4] ss:$28 sps:$4 sm:$0xff]  }
 0x5e3   :  { %2393 = vmatprep.subr.bf16.mxu0 %v3270_v39  ;;  %v3329_v39 = vld [vmem:[%s4422_s16 + $0x240] ss:$28 sps:$4 sm:$0xff]  }
 0x5e4   :  { %2394 = vmatpush1.bf16.msra.mxu0 %v3268_v41  ;;  %v3332_v41 = vld [vmem:[%s4422_s16 + $0x278] ss:$28 sps:$4 sm:$0xff]  }
 0x5e5   :  { %2395 = vmatprep.subr.bf16.mxu0 %v3276_v43  ;;  %v3335_v43 = vld [vmem:[%s4422_s16 + $0x2b0] ss:$28 sps:$4 sm:$0xff]  }
 0x5e8   :  { %2396 = vmatpush1.bf16.msra.mxu0 %v3274_v45  ;;  %v3338_v45 = vld [vmem:[%s4422_s16 + $0x2e8] ss:$28 sps:$4 sm:$0xff]  }
 0x5e9   :  { %2397 = vmatprep.subr.bf16.mxu0 %v3282_v47  ;;  %v3341_v47 = vld [vmem:[%s4422_s16 + $0x320] ss:$28 sps:$4 sm:$0xff]  }
 0x5ec   :  { %2398 = vmatpush1.bf16.msra.mxu0 %v3280_v49  ;;  %v3344_v49 = vld [vmem:[%s4422_s16 + $0x358] ss:$28 sps:$4 sm:$0xff]  }
 0x5ed   :  { %2870 = vmatprep.subr.bf16.mxu0 %v3286_v51  ;;  %v1713_v51 = vld [vmem:[%s4425_s17] sm:$0x7f] }
 0x697   :  { %v1424_v5 = vpop.f32.mrb[16].mxu1 }
 0x698   :  { %v1425_v7 = vadd.f32 %v2674_v2, %v1424_v5  ;;  %v2956_v8 = vpop.f32.mrb[17].mxu1  ;;  %v3283_v2 = vld [vmem:[%s4422_s16 + $0x10] ss:$28 sps:$4 sm:$0xff]   ;;  %v3287_v5 = vld [vmem:[%s4422_s16 + $0x18] ss:$28 sps:$4 sm:$0xff]  }
 0x699   :  { %v1427_v9 = vpop.f32.mrb[18].mxu1  ;;  %v3290_v8 = vld [vmem:[%s4422_s16 + $0x4c] ss:$28 sps:$4 sm:$0xff]  }
 0x69a   :  { %3359 = vtanh.f32 %v1425_v7  ;;  %v2957_v10 = vpop.f32.mrb[19].mxu1  ;;  %v3291_v9 = vld [vmem:[%s4422_s16 + $0x210] ss:$28 sps:$4 sm:$0xff]  }
 0x69b   :  { %v3288_v10 = vld [vmem:[%s4422_s16 + $0x48] ss:$28 sps:$4 sm:$0xff]  }
 0x6a4   :  { %v3360_v11 = vpop.eup %3359 }
 0x6a5   :  { %v1431_v13 = vpack.c.bf16 %v3360_v11, %v3360_v11  ;;  %v3292_v11 = vld [vmem:[%s4422_s16 + $0x50] ss:$28 sps:$4 sm:$0xff]  }
 0x6a7   :  { %1573 = vmatmul.mubr.bf16.vlgmr.msra.gmra.mrb[20].mxu1 %v1431_v13  ;;  %v3296_v13 = vld [vmem:[%s4422_s16 + $0x248] ss:$28 sps:$4 sm:$0xff]  }
 0x6a8   :  { %2327 = vmatpush1.bf16.msra.mxu1 %v3187_v12  ;;  %v3295_v12 = vld [vmem:[%s4422_s16 + $0x84] ss:$28 sps:$4 sm:$0xff]  }
 0x6a9   :  { %2328 = vmatprep.subr.bf16.mxu1 %v3195_v14  ;;  %v3293_v14 = vld [vmem:[%s4422_s16 + $0x80] ss:$28 sps:$4 sm:$0xff]  }
 0x6ac   :  { %2329 = vmatpush1.bf16.msra.mxu1 %v3193_v15  ;;  %v3297_v15 = vld [vmem:[%s4422_s16 + $0x88] ss:$28 sps:$4 sm:$0xff]  }
 0x6ad   :  { %2330 = vmatprep.subr.bf16.mxu1 %v3201_v16  ;;  %v3300_v16 = vld [vmem:[%s4422_s16 + $0xbc] ss:$28 sps:$4 sm:$0xff]  }
 0x6b0   :  { %2331 = vmatpush1.bf16.msra.mxu1 %v3199_v17  ;;  %v3301_v17 = vld [vmem:[%s4422_s16 + $0x280] ss:$28 sps:$4 sm:$0xff]  }
 0x6b1   :  { %2332 = vmatprep.subr.bf16.mxu1 %v3207_v18  ;;  %v3298_v18 = vld [vmem:[%s4422_s16 + $0xb8] ss:$28 sps:$4 sm:$0xff]  }
 0x6b4   :  { %2333 = vmatpush1.bf16.msra.mxu1 %v3205_v19  ;;  %v3302_v19 = vld [vmem:[%s4422_s16 + $0xc0] ss:$28 sps:$4 sm:$0xff]  }
 0x6b5   :  { %2334 = vmatprep.subr.bf16.mxu1 %v3213_v20  ;;  %v3305_v20 = vld [vmem:[%s4422_s16 + $0xf4] ss:$28 sps:$4 sm:$0xff]  }
 0x6b8   :  { %2335 = vmatpush1.bf16.msra.mxu1 %v3211_v21  ;;  %v3306_v21 = vld [vmem:[%s4422_s16 + $0x2b8] ss:$28 sps:$4 sm:$0xff]  }
 0x6b9   :  { %2336 = vmatprep.subr.bf16.mxu1 %v3219_v22  ;;  %v3303_v22 = vld [vmem:[%s4422_s16 + $0xf0] ss:$28 sps:$4 sm:$0xff]  }
 0x6bc   :  { %2337 = vmatpush1.bf16.msra.mxu1 %v3217_v1  ;;  %v3307_v1 = vld [vmem:[%s4422_s16 + $0xf8] ss:$28 sps:$4 sm:$0xff]  }
 0x6bd   :  { %2338 = vmatprep.subr.bf16.mxu1 %v3225_v23  ;;  %v3310_v23 = vld [vmem:[%s4422_s16 + $0x12c] ss:$28 sps:$4 sm:$0xff]  }
 0x6c0   :  { %2339 = vmatpush1.bf16.msra.mxu1 %v3223_v24  ;;  %v3311_v24 = vld [vmem:[%s4422_s16 + $0x2f0] ss:$28 sps:$4 sm:$0xff]  }
 0x6c1   :  { %2340 = vmatprep.subr.bf16.mxu1 %v3231_v25  ;;  %v3308_v25 = vld [vmem:[%s4422_s16 + $0x128] ss:$28 sps:$4 sm:$0xff]  }
 0x6c4   :  { %2341 = vmatpush1.bf16.msra.mxu1 %v3229_v26  ;;  %v3312_v26 = vld [vmem:[%s4422_s16 + $0x130] ss:$28 sps:$4 sm:$0xff]  }
 0x6c5   :  { %2342 = vmatprep.subr.bf16.mxu1 %v3237_v27  ;;  %v3315_v27 = vld [vmem:[%s4422_s16 + $0x164] ss:$28 sps:$4 sm:$0xff]  }
 0x6c8   :  { %2343 = vmatpush1.bf16.msra.mxu1 %v3235_v28  ;;  %v3316_v28 = vld [vmem:[%s4422_s16 + $0x328] ss:$28 sps:$4 sm:$0xff]  }
 0x6c9   :  { %2344 = vmatprep.subr.bf16.mxu1 %v3243_v29  ;;  %v3313_v29 = vld [vmem:[%s4422_s16 + $0x160] ss:$28 sps:$4 sm:$0xff]  }
 0x6cc   :  { %2345 = vmatpush1.bf16.msra.mxu1 %v3241_v30  ;;  %v3317_v30 = vld [vmem:[%s4422_s16 + $0x168] ss:$28 sps:$4 sm:$0xff]  }
 0x6cd   :  { %2346 = vmatprep.subr.bf16.mxu1 %v3249_v54  ;;  %v3320_v54 = vld [vmem:[%s4422_s16 + $0x19c] ss:$28 sps:$4 sm:$0xff]  }
 0x6d0   :  { %2347 = vmatpush1.bf16.msra.mxu1 %v3247_v31  ;;  %v3321_v31 = vld [vmem:[%s4422_s16 + $0x360] ss:$28 sps:$4 sm:$0xff]  }
 0x6d1   :  { %2348 = vmatprep.subr.bf16.mxu1 %v3255_v32  ;;  %v3318_v32 = vld [vmem:[%s4422_s16 + $0x198] ss:$28 sps:$4 sm:$0xff]  }
 0x6d4   :  { %2349 = vmatpush1.bf16.msra.mxu1 %v3253_v33  ;;  %v3322_v33 = vld [vmem:[%s4422_s16 + $0x1a0] ss:$28 sps:$4 sm:$0xff]  }
 0x6d5   :  { %2350 = vmatprep.subr.bf16.mxu1 %v3261_v34  ;;  %v3325_v34 = vld [vmem:[%s4422_s16 + $0x1d4] ss:$28 sps:$4 sm:$0xff]  }
 0x6d8   :  { %2351 = vmatpush1.bf16.msra.mxu1 %v3259_v36  ;;  %v3328_v36 = vld [vmem:[%s4422_s16 + $0x20c] ss:$28 sps:$4 sm:$0xff]  }
 0x6d9   :  { %2352 = vmatprep.subr.bf16.mxu1 %v3267_v38  ;;  %v3331_v38 = vld [vmem:[%s4422_s16 + $0x244] ss:$28 sps:$4 sm:$0xff]  }
 0x6dc   :  { %2353 = vmatpush1.bf16.msra.mxu1 %v3265_v40  ;;  %v3334_v40 = vld [vmem:[%s4422_s16 + $0x27c] ss:$28 sps:$4 sm:$0xff]  }
 0x6dd   :  { %2354 = vmatprep.subr.bf16.mxu1 %v3273_v42  ;;  %v3337_v42 = vld [vmem:[%s4422_s16 + $0x2b4] ss:$28 sps:$4 sm:$0xff]  }
 0x6e0   :  { %2355 = vmatpush1.bf16.msra.mxu1 %v3271_v44  ;;  %v3340_v44 = vld [vmem:[%s4422_s16 + $0x2ec] ss:$28 sps:$4 sm:$0xff]  }
 0x6e1   :  { %2356 = vmatprep.subr.bf16.mxu1 %v3279_v46  ;;  %v3343_v46 = vld [vmem:[%s4422_s16 + $0x324] ss:$28 sps:$4 sm:$0xff]  }
 0x6e4   :  { %2357 = vmatpush1.bf16.msra.mxu1 %v3277_v48  ;;  %v3346_v48 = vld [vmem:[%s4422_s16 + $0x35c] ss:$28 sps:$4 sm:$0xff]  }
 0x6e5   :  { %2408 = vmatprep.subr.bf16.mxu1 %v3285_v50  ;;  %v1725_v50 = vsub.s32 2, %v3848_v3 }
 0x77a   :  { %v1574_v56 = vpop.f32.mrb[20].mxu1 }
 0x77b   :  { %v1575_v57 = vadd.f32 %v1574_v56, %v1453_v53  ;;  %v1576_v58 = vpop.f32.mrb[21].mxu1  ;;  %v1718_v53 = vrot.slane %v1713_v51, %v3851_v4  ;;  %v1722_v56 = vrot.slane %v1713_v51, %v3857_v6 }
 0x77c   :  { %v1577_v59 = vadd.f32 %v1576_v58, %v1457_v55  ;;  %v1578_v60 = vpop.f32.mrb[22].mxu1  ;;  %v1726_v55 = vrot.slane %v1713_v51, %v1725_v50 }
 0x77d   :  { %3361 = vtanh.f32 %v1575_v57  ;;  %v1579_v61 = vpop.f32.mrb[23].mxu1  ;;  %v1730_v57 = vrot.slane %v1713_v51, %v1729_v52 }
 0x77e   :  { %3363 = vtanh.f32 %v1577_v59 }
 0x787   :  { %v3362_v62 = vpop.eup %3361 }
 0x788   :  { %v3364_v63 = vpop.eup %3363  ;;  %v4247_v7 = vpack.c.bf16 %v3362_v62, %v3362_v62 }
 0x789   :  { %v1584_v0 = vpack.c.bf16 %v3364_v63, %v3364_v63 }
 0x78b   :  { %2358 = vmatprep.mubr.bf16.mxu1 %v1584_v0  ;;  %2399 = vmatprep.mubr.bf16.mxu0 %v1584_v0 }
 0x78c   :  { %2359 = vmatmul.mubr.bf16.vlgmr.msra.gmra.mrb[24].mxu1 %v4247_v7  ;;  %2400 = vmatmul.mubr.bf16.vlgmr.msra.gmra.mrb[4].mxu0 %v4247_v7 }
 0x78d   :  { %2409 = vmatpush1.bf16.msra.mxu1 %v3283_v2  ;;  %2871 = vmatpush3.bf16.msra.mxu0 %v3287_v5 }
 0x78e   :  { %2440 = vmatprep.mubr.bf16.mxu1 %v1584_v0  ;;  %2481 = vmatprep.mubr.bf16.mxu0 %v1584_v0 }
 0x78f   :  { %2410 = vmatprep.subr.bf16.mxu1 %v3290_v8  ;;  %2872 = vmatprep.subr.bf16.mxu0 %v3291_v9 }
 0x791   :  { %2411 = vmatpush1.bf16.msra.mxu1 %v3288_v10  ;;  %2873 = vmatpush3.bf16.msra.mxu0 %v3292_v11 }
 0x792   :  { %2412 = vmatprep.subr.bf16.mxu1 %v3295_v12  ;;  %2874 = vmatprep.subr.bf16.mxu0 %v3296_v13 }
 0x795   :  { %2413 = vmatpush1.bf16.msra.mxu1 %v3293_v14  ;;  %2875 = vmatpush3.bf16.msra.mxu0 %v3297_v15  ;;  %v1741_v14 = vsub.s32 6, %v3848_v3 }
 0x796   :  { %2414 = vmatprep.subr.bf16.mxu1 %v3300_v16  ;;  %2876 = vmatprep.subr.bf16.mxu0 %v3301_v17 }
 0x797   :  { %v1742_v16 = vrot.slane %v1713_v51, %v1741_v14 }
 0x799   :  { %2415 = vmatpush1.bf16.msra.mxu1 %v3298_v18  ;;  %2877 = vmatpush3.bf16.msra.mxu0 %v3302_v19 }
 0x79a   :  { %2416 = vmatprep.subr.bf16.mxu1 %v3305_v20  ;;  %2878 = vmatprep.subr.bf16.mxu0 %v3306_v21 }
 0x79d   :  { %2417 = vmatpush1.bf16.msra.mxu1 %v3303_v22  ;;  %2879 = vmatpush3.bf16.msra.mxu0 %v3307_v1 }
 0x79e   :  { %2418 = vmatprep.subr.bf16.mxu1 %v3310_v23  ;;  %2880 = vmatprep.subr.bf16.mxu0 %v3311_v24  ;;  %v1733_v23 = vsub.s32 4, %v3848_v3  ;;  %v1737_v24 = vsub.s32 5, %v3848_v3 }
 0x7a1   :  { %2419 = vmatpush1.bf16.msra.mxu1 %v3308_v25  ;;  %2881 = vmatpush3.bf16.msra.mxu0 %v3312_v26  ;;  %v1734_v25 = vrot.slane %v1713_v51, %v1733_v23  ;;  %v1738_v26 = vrot.slane %v1713_v51, %v1737_v24 }
 0x7a2   :  { %2420 = vmatprep.subr.bf16.mxu1 %v3315_v27  ;;  %2882 = vmatprep.subr.bf16.mxu0 %v3316_v28 }
 0x7a5   :  { %2421 = vmatpush1.bf16.msra.mxu1 %v3313_v29  ;;  %2883 = vmatpush3.bf16.msra.mxu0 %v3317_v30 }
 0x7a6   :  { %2422 = vmatprep.subr.bf16.mxu1 %v3320_v54  ;;  %2884 = vmatprep.subr.bf16.mxu0 %v3321_v31 }
 0x7a9   :  { %2423 = vmatpush1.bf16.msra.mxu1 %v3318_v32  ;;  %2885 = vmatpush3.bf16.msra.mxu0 %v3322_v33 }
 0x7aa   :  { %2424 = vmatprep.subr.bf16.mxu1 %v3325_v34 }
 0x7ac   :  { %2482 = vmatmul.mubr.bf16.vlgmr.msra.gmra.mrb[8].mxu0 %v4247_v7 }
 0x7ad   :  { %2425 = vmatpush1.bf16.msra.mxu1 %v3323_v35 }
 0x7ae   :  { %2426 = vmatprep.subr.bf16.mxu1 %v3328_v36 }
 0x7b1   :  { %2427 = vmatpush1.bf16.msra.mxu1 %v3326_v37 }
 0x7b2   :  { %2428 = vmatprep.subr.bf16.mxu1 %v3331_v38 }
 0x7b5   :  { %2429 = vmatpush1.bf16.msra.mxu1 %v3329_v39 }
 0x7b6   :  { %2430 = vmatprep.subr.bf16.mxu1 %v3334_v40 }
 0x7b9   :  { %2431 = vmatpush1.bf16.msra.mxu1 %v3332_v41 }
 0x7ba   :  { %2432 = vmatprep.subr.bf16.mxu1 %v3337_v42 }
 0x7bd   :  { %2433 = vmatpush1.bf16.msra.mxu1 %v3335_v43 }
 0x7be   :  { %2434 = vmatprep.subr.bf16.mxu1 %v3340_v44 }
 0x7c1   :  { %2435 = vmatpush1.bf16.msra.mxu1 %v3338_v45 }
 0x7c2   :  { %2436 = vmatprep.subr.bf16.mxu1 %v3343_v46 }
 0x7c5   :  { %2437 = vmatpush1.bf16.msra.mxu1 %v3341_v47 }
 0x7c6   :  { %2438 = vmatprep.subr.bf16.mxu1 %v3346_v48 }
 0x7c9   :  { %2439 = vmatpush1.bf16.msra.mxu1 %v3344_v49 }
 0x7cc   :  { %2441 = vmatmul.mubr.bf16.vlgmr.msra.gmra.mrb[28].mxu1 %v4247_v7 }
 0x85f   :  { %v2360_v58 = vpop.f32.mrb[24].mxu1  ;;  %v2401_v59 = vpop.f32.mrb[4].mxu0 }
 0x860   :  { %v2361_v60 = vadd.f32 %v2360_v58, %v1718_v53  ;;  %v2402_v61 = vadd.f32 %v2401_v59, %v1726_v55  ;;  %v2362_v62 = vpop.f32.mrb[25].mxu1  ;;  %v2403_v63 = vpop.f32.mrb[5].mxu0 }
 0x861   :  { %v2363_v0 = vadd.f32 %v2362_v62, %v1722_v56  ;;  %v2404_v2 = vadd.f32 %v2403_v63, %v1730_v57  ;;  %v2364_v5 = vpop.f32.mrb[26].mxu1  ;;  %v2405_v7 = vpop.f32.mrb[6].mxu0 }
 0x862   :  { %3365 = vtanh.f32 %v2361_v60  ;;  %v2365_v8 = vpop.f32.mrb[27].mxu1  ;;  %v2406_v9 = vpop.f32.mrb[7].mxu0 }
 0x863   :  { %3367 = vtanh.f32 %v2402_v61 }
 0x864   :  { %3369 = vtanh.f32 %v2363_v0 }
 0x865   :  { %3371 = vtanh.f32 %v2404_v2 }
 0x86c   :  { %v3366_v4 = vpop.eup %3365 }
 0x86d   :  { %v3368_v10 = vpop.eup %3367 }
 0x86e   :  { %v3370_v6 = vpop.eup %3369 }
 0x86f   :  { %v3372_v11 = vpop.eup %3371  ;;  %v2815_v12 = vpack.c.bf16 %v3370_v6, %v3366_v4 }
 0x870   :  { %v2816_v13 = vpack.c.bf16 %v3372_v11, %v3368_v10 }
 0x871   :  { %2525 = vst [vmem:[%s4426_s18] sm:$0xff] %v2815_v12 }
 0x872   :  { %2526 = vst [vmem:[%s4426_s18 + $0x8] sm:$0xff] %v2816_v13 }
 0x87f   :  { %v2886_v15 = vpop.f32.mrb[8].mxu0 }
 0x880   :  { %v2887_v17 = vpop.f32.mrb[9].mxu0 }
 0x881   :  { %v2888_v18 = vadd.f32 %v2887_v17, %v2886_v15  ;;  %v2889_v19 = vpop.f32.mrb[10].mxu0 }
 0x882   :  { %v2890_v20 = vpop.f32.mrb[11].mxu0 }
 0x883   :  { %v2484_v21 = vadd.f32 %v2888_v18, %v1742_v16 }
 0x885   :  { %3373 = vtanh.f32 %v2484_v21 }
 0x88f   :  { %v3374_v22 = vpop.eup %3373 }
 0x890   :  { %v2818_v1 = vpack.c.bf16 %v3374_v22, %v3374_v22 }
 0x892   :  { %2529 = vst.msk [vmem:[%s4426_s18 + $0x18] sm:$0xf] %vm2528_vm4, %v2818_v1 }
 0x89f   :  { %v2442_v27 = vpop.f32.mrb[28].mxu1 }
 0x8a0   :  { %v2443_v28 = vadd.f32 %v2442_v27, %v1734_v25  ;;  %v2444_v29 = vpop.f32.mrb[29].mxu1 }
 0x8a1   :  { %v2445_v30 = vadd.f32 %v2444_v29, %v1738_v26  ;;  %v2446_v54 = vpop.f32.mrb[30].mxu1 }
 0x8a2   :  { %3375 = vtanh.f32 %v2443_v28  ;;  %v2447_v31 = vpop.f32.mrb[31].mxu1 }
 0x8a3   :  { %3377 = vtanh.f32 %v2445_v30 }
 0x8ac   :  { %v3376_v32 = vpop.eup %3375 }
 0x8ad   :  { %v3378_v33 = vpop.eup %3377 }
 0x8ae   :  { %v2817_v34 = vpack.c.bf16 %v3378_v33, %v3376_v32 }
 0x8b0   :  { %2527 = vst [vmem:[%s4426_s18 + $0x10] sm:$0xff] %v2817_v34 }

</bundles_post_ra>
